<compile_context>
chip_gen: v7x
topology: tpu7x:2x2x1
jax: 0.10.0
libtpu: 0.0.40
codegen_flags: <defaults>
</compile_context>

<pallas_src>
import math
from functools import partial

import jax
import jax.numpy as jnp
from jax.experimental import pallas as pl
from jax.experimental.pallas import tpu as pltpu

LN_EPS = 1e-5


# ----------------------------------------------------------------------------
# Helpers
# ----------------------------------------------------------------------------
def _pick_tile(dim, target, quantum):
    """Largest tile <= target that divides dim and is a multiple of quantum,
    falling back to the full dimension (always a legal block)."""
    if dim <= target:
        return dim
    t = (target // quantum) * quantum
    while t >= quantum:
        if dim % t == 0:
            return t
        t -= quantum
    return dim


def _layernorm(y, g, bt):
    mu = jnp.mean(y, axis=-1, keepdims=True)
    var = jnp.mean(jnp.square(y - mu), axis=-1, keepdims=True)
    return (y - mu) * jax.lax.rsqrt(var + LN_EPS) * g + bt


# ----------------------------------------------------------------------------
# Pallas kernels
# ----------------------------------------------------------------------------
def linear_kernel(x_ref, w_ref, b_ref, o_ref, acc_ref, *, activation):
    """Tiled x @ W + b (+ optional activation). Grid = (M/tm, N/tn, K/tk)."""
    @pl.when(pl.program_id(2) == 0)
    def _init():
        acc_ref[...] = jnp.zeros_like(acc_ref)

    acc_ref[...] += jnp.dot(x_ref[...].astype(jnp.bfloat16),
                            w_ref[...].astype(jnp.bfloat16),
                            preferred_element_type=jnp.float32)

    @pl.when(pl.program_id(2) == pl.num_programs(2) - 1)
    def _finalize():
        y = acc_ref[...] + b_ref[...]
        if activation == "relu":
            y = jnp.maximum(y, 0.0)
        elif activation == "tanh":
            y = jnp.tanh(y)
        o_ref[...] = y.astype(o_ref.dtype)


def make_linear_norm_kernel(activation, has_residual):
    """Tiled x @ W + b (+act) (+residual) followed by LayerNorm over N.
    N is NOT tiled (full hidden dim) so the normalization is exact.
    Grid = (M/tm, K/tk)."""
    def _epilogue(acc, b, res, g, bt):
        y = acc + b
        if activation == "relu":
            y = jnp.maximum(y, 0.0)
        elif activation == "tanh":
            y = jnp.tanh(y)
        if res is not None:
            y = y + res
        return _layernorm(y, g, bt)

    def _accumulate(x_ref, w_ref, acc_ref):
        @pl.when(pl.program_id(1) == 0)
        def _init():
            acc_ref[...] = jnp.zeros_like(acc_ref)
        acc_ref[...] += jnp.dot(x_ref[...].astype(jnp.bfloat16),
                                w_ref[...].astype(jnp.bfloat16),
                                preferred_element_type=jnp.float32)

    if has_residual:
        def kernel(x_ref, w_ref, b_ref, res_ref, g_ref, bt_ref, o_ref, acc_ref):
            _accumulate(x_ref, w_ref, acc_ref)

            @pl.when(pl.program_id(1) == pl.num_programs(1) - 1)
            def _fin():
                o_ref[...] = _epilogue(acc_ref[...], b_ref[...], res_ref[...],
                                       g_ref[...], bt_ref[...]).astype(o_ref.dtype)
    else:
        def kernel(x_ref, w_ref, b_ref, g_ref, bt_ref, o_ref, acc_ref):
            _accumulate(x_ref, w_ref, acc_ref)

            @pl.when(pl.program_id(1) == pl.num_programs(1) - 1)
            def _fin():
                o_ref[...] = _epilogue(acc_ref[...], b_ref[...], None,
                                       g_ref[...], bt_ref[...]).astype(o_ref.dtype)
    return kernel


def ffn_addnorm_kernel(x_ref, w1_ref, b1_ref, w2_ref, b2_ref,
                       g_ref, bt_ref, o_ref):
    """Position-wise FFN + residual + LayerNorm fused.  The (tm, F) ReLU
    intermediate lives only in VMEM/vregs.  Grid = (M/tm,)."""
    x = x_ref[...]
    h = jnp.dot(x.astype(jnp.bfloat16), w1_ref[...],
                preferred_element_type=jnp.float32) + b1_ref[...]
    h = jnp.maximum(h, 0.0)
    y = jnp.dot(h.astype(jnp.bfloat16), w2_ref[...],
                preferred_element_type=jnp.float32) + b2_ref[...]
    o_ref[...] = _layernorm(y + x, g_ref[...], bt_ref[...]).astype(o_ref.dtype)


def attention_kernel(vl_ref, q_ref, k_ref, v_ref, o_ref, *,
                     num_heads, head_dim, scale):
    """Masked softmax(QK^T/sqrt(d)) @ V for one batch element, all heads.
    q/k/v/o blocks are (1, S, H): lane-dense output (H on lanes), heads split
    in-kernel with static slices (no XLA transposes)."""
    b = pl.program_id(0)
    vl = vl_ref[b]                                   # scalar from SMEM
    q = q_ref[0]                                     # (S, H)
    k = k_ref[0]
    v = v_ref[0]
    S = q.shape[0]
    key_idx = jax.lax.broadcasted_iota(jnp.int32, (S, S), 1)
    mask = key_idx < vl                              # d2l masked_softmax (1-D lens)

    heads_out = []
    for h in range(num_heads):
        lo = h * head_dim
        qh = q[:, lo:lo + head_dim].astype(jnp.bfloat16)
        kh = k[:, lo:lo + head_dim].astype(jnp.bfloat16)
        vh = v[:, lo:lo + head_dim].astype(jnp.bfloat16)
        scores = jax.lax.dot_general(
            qh, kh, (((1,), (1,)), ((), ())),
            preferred_element_type=jnp.float32) * scale        # (S, S)
        scores = jnp.where(mask, scores, -1e6)
        m = jnp.max(scores, axis=-1, keepdims=True)
        p = jnp.exp(scores - m)
        denom = jnp.sum(p, axis=-1, keepdims=True)
        probs = p * pl.reciprocal(denom, approx=True)
        heads_out.append(jnp.dot(probs.astype(jnp.bfloat16), vh,
                                 preferred_element_type=jnp.float32))
    o_ref[0] = jnp.concatenate(heads_out, axis=-1).astype(o_ref.dtype)


# ----------------------------------------------------------------------------
# Pallas wrappers
# ----------------------------------------------------------------------------
def linear(x, w, b, activation="none", out_dtype=jnp.float32):
    M, K = x.shape
    N = w.shape[1]
    tm = _pick_tile(M, 256, 8)
    tn = _pick_tile(N, 256, 128)
    tk = _pick_tile(K, 512, 128)
    grid = (M // tm, N // tn, K // tk)
    return pl.pallas_call(
        partial(linear_kernel, activation=activation),
        out_shape=jax.ShapeDtypeStruct((M, N), out_dtype),
        grid_spec=pltpu.PrefetchScalarGridSpec(
            num_scalar_prefetch=0,
            grid=grid,
            in_specs=[pl.BlockSpec((tm, tk), lambda i, j, k: (i, k)),
                      pl.BlockSpec((tk, tn), lambda i, j, k: (k, j)),
                      pl.BlockSpec((1, tn), lambda i, j, k: (0, j))],
            out_specs=pl.BlockSpec((tm, tn), lambda i, j, k: (i, j)),
            scratch_shapes=[pltpu.VMEM((tm, tn), jnp.float32)]),
        compiler_params=pltpu.CompilerParams(
            dimension_semantics=("parallel", "parallel", "arbitrary")),
    )(x, w, b.reshape(1, N).astype(jnp.float32))


def linear_norm(x, w, b, gamma, beta, residual=None, activation="none"):
    """x @ W + b (+act) (+residual) -> LayerNorm, fused.  N kept un-tiled."""
    M, K = x.shape
    N = w.shape[1]
    tm = _pick_tile(M, 256, 8)
    tk = _pick_tile(K, 512, 128)
    grid = (M // tm, K // tk)

    in_specs = [pl.BlockSpec((tm, tk), lambda i, k: (i, k)),
                pl.BlockSpec((tk, N), lambda i, k: (k, 0)),
                pl.BlockSpec((1, N), lambda i, k: (0, 0))]
    args = [x, w, b.reshape(1, N).astype(jnp.float32)]
    if residual is not None:
        in_specs.append(pl.BlockSpec((tm, N), lambda i, k: (i, 0)))
        args.append(residual)
    in_specs += [pl.BlockSpec((1, N), lambda i, k: (0, 0)),
                 pl.BlockSpec((1, N), lambda i, k: (0, 0))]
    args += [gamma.reshape(1, N), beta.reshape(1, N)]

    return pl.pallas_call(
        make_linear_norm_kernel(activation, residual is not None),
        out_shape=jax.ShapeDtypeStruct((M, N), jnp.float32),
        grid_spec=pltpu.PrefetchScalarGridSpec(
            num_scalar_prefetch=0,
            grid=grid,
            in_specs=in_specs,
            out_specs=pl.BlockSpec((tm, N), lambda i, k: (i, 0)),
            scratch_shapes=[pltpu.VMEM((tm, N), jnp.float32)]),
        compiler_params=pltpu.CompilerParams(
            dimension_semantics=("parallel", "arbitrary")),
    )(*args)


def ffn_addnorm(x, w1, b1, w2, b2, gamma, beta):
    M, H = x.shape
    F = w1.shape[1]
    tm = _pick_tile(M, 512, 8)
    grid = (M // tm,)
    return pl.pallas_call(
        ffn_addnorm_kernel,
        out_shape=jax.ShapeDtypeStruct((M, H), jnp.float32),
        grid_spec=pltpu.PrefetchScalarGridSpec(
            num_scalar_prefetch=0,
            grid=grid,
            in_specs=[pl.BlockSpec((tm, H), lambda i: (i, 0)),
                      pl.BlockSpec((H, F), lambda i: (0, 0)),
                      pl.BlockSpec((1, F), lambda i: (0, 0)),
                      pl.BlockSpec((F, H), lambda i: (0, 0)),
                      pl.BlockSpec((1, H), lambda i: (0, 0)),
                      pl.BlockSpec((1, H), lambda i: (0, 0)),
                      pl.BlockSpec((1, H), lambda i: (0, 0))],
            out_specs=pl.BlockSpec((tm, H), lambda i: (i, 0))),
        compiler_params=pltpu.CompilerParams(dimension_semantics=("parallel",)),
    )(x, w1, b1.reshape(1, F).astype(jnp.float32), w2,
      b2.reshape(1, H).astype(jnp.float32),
      gamma.reshape(1, H), beta.reshape(1, H))


def multihead_attention(q, k, v, valid_lens, num_heads):
    B, S, H = q.shape
    Dh = H // num_heads
    scale = 1.0 / math.sqrt(Dh)
    grid_spec = pltpu.PrefetchScalarGridSpec(
        num_scalar_prefetch=1,
        grid=(B,),
        in_specs=[pl.BlockSpec((1, S, H), lambda b, vl: (b, 0, 0)),
                  pl.BlockSpec((1, S, H), lambda b, vl: (b, 0, 0)),
                  pl.BlockSpec((1, S, H), lambda b, vl: (b, 0, 0))],
        out_specs=pl.BlockSpec((1, S, H), lambda b, vl: (b, 0, 0)),
    )
    return pl.pallas_call(
        partial(attention_kernel, num_heads=num_heads, head_dim=Dh, scale=scale),
        out_shape=jax.ShapeDtypeStruct((B, S, H), jnp.float32),
        grid_spec=grid_spec,
        compiler_params=pltpu.CompilerParams(dimension_semantics=("parallel",)),
    )(valid_lens.astype(jnp.int32), q, k, v)


# ----------------------------------------------------------------------------
# Model glue (plain JAX): embeddings, reshapes, head gathers
# ----------------------------------------------------------------------------
def encoder_block(p, X, valid_lens, num_heads):
    B, S, H = X.shape
    Xf = X.reshape(B * S, H)

    # Fused Q/K/V projection: one matmul, (H, 3H) weight.
    qkv = linear(Xf, p["Wqkv"], p["bqkv"]).reshape(B, S, 3 * H)
    q, k, v = qkv[..., :H], qkv[..., H:2 * H], qkv[..., 2 * H:]

    attn = multihead_attention(q, k, v, valid_lens, num_heads)   # (B, S, H)

    # Output projection fused with residual add + LayerNorm (AddNorm1).
    Y = linear_norm(attn.reshape(B * S, H), p["Wo"], p["bo"],
                    p["ln1_g"], p["ln1_b"], residual=Xf)

    # Position-wise FFN fused with residual add + LayerNorm (AddNorm2).
    out = ffn_addnorm(Y, p["W1"], p["b1"], p["W2"], p["b2"],
                      p["ln2_g"], p["ln2_b"])
    return out.reshape(B, S, H)


def bert_forward(params, cfg, tokens, segments, valid_lens, pred_positions):
    B, S = tokens.shape

    # --- BERT_Encoder ---
    X = (params["token_embedding"][tokens]
         + params["segment_embedding"][segments]
         + params["pos_embedding"][:, :S, :])
    for blk in params["blocks"]:
        X = encoder_block(blk, X, valid_lens, cfg["num_heads"])
    encoded_X = X

    # --- MaskLM: Linear+ReLU+LayerNorm fused, then vocab projection ---
    npred = pred_positions.shape[1]
    batch_idx = jnp.repeat(jnp.arange(B), npred)
    masked_X = encoded_X[batch_idx, pred_positions.reshape(-1)]   # (B*npred, H)
    h = linear_norm(masked_X, params["mlm_W1"], params["mlm_b1"],
                    params["mlm_ln_g"], params["mlm_ln_b"],
                    residual=None, activation="relu")
    mlm_Y_hat = linear(h, params["mlm_W2"], params["mlm_b2"])
    mlm_Y_hat = mlm_Y_hat.reshape(B, npred, cfg["vocab_size"])

    # --- NSP head: tiny matmuls, overhead-dominated in Pallas -> plain jnp ---
    cls = encoded_X[:, 0, :]
    hid = jnp.tanh(cls @ params["hid_W"] + params["hid_b"])
    nsp_Y_hat = hid @ params["nsp_W"] + params["nsp_b"]

    return encoded_X, mlm_Y_hat, nsp_Y_hat


# ----------------------------------------------------------------------------
# Deterministic parameter init (synthetic weights; matmul weights in bf16)
# ----------------------------------------------------------------------------
def init_params(key, cfg):
    V, H, F, L = (cfg["vocab_size"], cfg["num_hiddens"],
                  cfg["ffn_num_hiddens"], cfg["num_layers"])
    max_len = cfg["max_len"]
    keys = iter(jax.random.split(key, 32 + 8 * L))

    def nrm(shape, dtype=jnp.bfloat16, std=0.02):
        return (jax.random.normal(next(keys), shape, jnp.float32) * std).astype(dtype)

    params = {
        "token_embedding": jax.random.normal(next(keys), (V, H), jnp.float32),
        "segment_embedding": jax.random.normal(next(keys), (2, H), jnp.float32),
        "pos_embedding": jax.random.normal(next(keys), (1, max_len, H),
                                           jnp.float32),
        "blocks": [],
        # MaskLM mlp: Linear(H,H) -> ReLU -> LayerNorm(H) -> Linear(H,V)
        "mlm_W1": nrm((H, H)), "mlm_b1": jnp.zeros((H,), jnp.float32),
        "mlm_ln_g": jnp.ones((H,), jnp.float32),
        "mlm_ln_b": jnp.zeros((H,), jnp.float32),
        "mlm_W2": nrm((H, V)), "mlm_b2": jnp.zeros((V,), jnp.float32),
        # hidden: Linear(H,H) + Tanh (plain jnp path -> keep f32)
        "hid_W": nrm((H, H), jnp.float32), "hid_b": jnp.zeros((H,), jnp.float32),
        # NextSentencePred: Linear(H,2)
        "nsp_W": nrm((H, 2), jnp.float32), "nsp_b": jnp.zeros((2,), jnp.float32),
    }
    for _ in range(L):
        params["blocks"].append({
            "Wqkv": nrm((H, 3 * H)), "bqkv": jnp.zeros((3 * H,), jnp.float32),
            "Wo": nrm((H, H)), "bo": jnp.zeros((H,), jnp.float32),
            "ln1_g": jnp.ones((H,), jnp.float32),
            "ln1_b": jnp.zeros((H,), jnp.float32),
            "W1": nrm((H, F)), "b1": jnp.zeros((F,), jnp.float32),
            "W2": nrm((F, H)), "b2": jnp.zeros((H,), jnp.float32),
            "ln2_g": jnp.ones((H,), jnp.float32),
            "ln2_b": jnp.zeros((H,), jnp.float32),
        })
    return params


# ----------------------------------------------------------------------------
if __name__ == "__main__":
    cfg = dict(vocab_size=256, num_hiddens=128, ffn_num_hiddens=256,
               num_heads=2, num_layers=2, max_len=64)

    root = jax.random.PRNGKey(0)
    k_par, k_tok, k_seg, k_pos = jax.random.split(root, 4)

    params = init_params(k_par, cfg)

    B, S, NPRED = 2, 8, 3
    tokens = jax.random.randint(k_tok, (B, S), 0, cfg["vocab_size"], jnp.int32)
    segments = jax.random.randint(k_seg, (B, S), 0, 2, jnp.int32)
    valid_lens = jnp.array([8, 5], dtype=jnp.int32)
    pred_positions = jax.random.randint(k_pos, (B, NPRED), 0, S, jnp.int32)

    # Single jitted program: all pallas_calls + glue compile/run as one graph.
    fwd = jax.jit(lambda p, tok, seg, vl, pp: bert_forward(p, cfg, tok, seg, vl, pp))

    encoded_X, mlm_Y_hat, nsp_Y_hat = fwd(params, tokens, segments,
                                          valid_lens, pred_positions)
    jax.block_until_ready((encoded_X, mlm_Y_hat, nsp_Y_hat))

    assert encoded_X.shape == (B, S, cfg["num_hiddens"])
    assert mlm_Y_hat.shape == (B, NPRED, cfg["vocab_size"])
    assert nsp_Y_hat.shape == (B, 2)
    assert bool(jnp.all(jnp.isfinite(encoded_X)))
    assert bool(jnp.all(jnp.isfinite(mlm_Y_hat)))
    assert bool(jnp.all(jnp.isfinite(nsp_Y_hat)))
    print("KERNEL_OK")
</pallas_src>

<mosaic_0001>
module attributes {stable_mosaic.version = 11 : i64} {
  func.func @ffn_addnorm_kernel(%arg0: i32, %arg1: memref<16x128xf32, #tpu.memory_space<vmem>>, %arg2: memref<128x256xbf16, #tpu.memory_space<vmem>>, %arg3: memref<1x256xf32, #tpu.memory_space<vmem>>, %arg4: memref<256x128xbf16, #tpu.memory_space<vmem>>, %arg5: memref<1x128xf32, #tpu.memory_space<vmem>>, %arg6: memref<1x128xf32, #tpu.memory_space<vmem>>, %arg7: memref<1x128xf32, #tpu.memory_space<vmem>>, %arg8: memref<16x128xf32, #tpu.memory_space<vmem>>) attributes {dimension_semantics = [#tpu.dimension_semantics<parallel>], iteration_bounds = array<i64: 1>, scalar_prefetch = 0 : i64, scratch_operands = 0 : i64, tpu.core_type = #tpu.core_type<tc>, window_params = [{transform_indices = @transform_0, window_bounds = array<i64: 16, 128>}, {pipeline_mode = #tpu.pipeline_mode<synchronous>, transform_indices = @transform_1, window_bounds = array<i64: 128, 256>}, {pipeline_mode = #tpu.pipeline_mode<synchronous>, transform_indices = @transform_2, window_bounds = array<i64: 1, 256>}, {pipeline_mode = #tpu.pipeline_mode<synchronous>, transform_indices = @transform_3, window_bounds = array<i64: 256, 128>}, {pipeline_mode = #tpu.pipeline_mode<synchronous>, transform_indices = @transform_4, window_bounds = array<i64: 1, 128>}, {pipeline_mode = #tpu.pipeline_mode<synchronous>, transform_indices = @transform_5, window_bounds = array<i64: 1, 128>}, {pipeline_mode = #tpu.pipeline_mode<synchronous>, transform_indices = @transform_6, window_bounds = array<i64: 1, 128>}, {transform_indices = @transform_7, window_bounds = array<i64: 16, 128>}]} {
    %c0 = arith.constant 0 : index
    %c0_0 = arith.constant 0 : index
    %0 = vector.load %arg1[%c0, %c0_0] : memref<16x128xf32, #tpu.memory_space<vmem>>, vector<16x128xf32>
    %1 = arith.truncf %0 : vector<16x128xf32> to vector<16x128xbf16>
    %c0_1 = arith.constant 0 : index
    %c0_2 = arith.constant 0 : index
    %2 = vector.load %arg2[%c0_1, %c0_2] : memref<128x256xbf16, #tpu.memory_space<vmem>>, vector<128x256xbf16>
    %cst = arith.constant dense<0.000000e+00> : vector<16x256xf32>
    %3 = tpu.matmul %1, %2, %cst {dimension_numbers = #tpu.dot_dimension_numbers<[1], [0], [0], [1], [0, 0, 1, 1], [], []>} : vector<16x128xbf16>, vector<128x256xbf16>, vector<16x256xf32> -> vector<16x256xf32>
    %c0_3 = arith.constant 0 : index
    %c0_4 = arith.constant 0 : index
    %4 = vector.load %arg3[%c0_3, %c0_4] : memref<1x256xf32, #tpu.memory_space<vmem>>, vector<1x256xf32>
    %5 = vector.broadcast %4 : vector<1x256xf32> to vector<16x256xf32>
    %6 = arith.addf %3, %5 : vector<16x256xf32>
    %cst_5 = arith.constant 0.000000e+00 : f32
    %7 = vector.broadcast %cst_5 : f32 to vector<16x256xf32>
    %8 = arith.maximumf %6, %7 : vector<16x256xf32>
    %9 = arith.truncf %8 : vector<16x256xf32> to vector<16x256xbf16>
    %c0_6 = arith.constant 0 : index
    %c0_7 = arith.constant 0 : index
    %10 = vector.load %arg4[%c0_6, %c0_7] : memref<256x128xbf16, #tpu.memory_space<vmem>>, vector<256x128xbf16>
    %cst_8 = arith.constant dense<0.000000e+00> : vector<16x128xf32>
    %11 = tpu.matmul %9, %10, %cst_8 {dimension_numbers = #tpu.dot_dimension_numbers<[1], [0], [0], [1], [0, 0, 1, 1], [], []>} : vector<16x256xbf16>, vector<256x128xbf16>, vector<16x128xf32> -> vector<16x128xf32>
    %c0_9 = arith.constant 0 : index
    %c0_10 = arith.constant 0 : index
    %12 = vector.load %arg5[%c0_9, %c0_10] : memref<1x128xf32, #tpu.memory_space<vmem>>, vector<1x128xf32>
    %13 = vector.broadcast %12 : vector<1x128xf32> to vector<16x128xf32>
    %14 = arith.addf %11, %13 : vector<16x128xf32>
    %15 = arith.addf %14, %0 : vector<16x128xf32>
    %c0_11 = arith.constant 0 : index
    %c0_12 = arith.constant 0 : index
    %16 = vector.load %arg6[%c0_11, %c0_12] : memref<1x128xf32, #tpu.memory_space<vmem>>, vector<1x128xf32>
    %c0_13 = arith.constant 0 : index
    %c0_14 = arith.constant 0 : index
    %17 = vector.load %arg7[%c0_13, %c0_14] : memref<1x128xf32, #tpu.memory_space<vmem>>, vector<1x128xf32>
    %cst_15 = arith.constant dense<0.000000e+00> : vector<16xf32>
    %18 = vector.multi_reduction <add>, %15, %cst_15 [1] : vector<16x128xf32> to vector<16xf32>
    %19 = vector.shape_cast %18 : vector<16xf32> to vector<16x1xf32>
    %cst_16 = arith.constant 1.280000e+02 : f32
    %20 = vector.broadcast %cst_16 : f32 to vector<16x1xf32>
    %21 = arith.divf %19, %20 : vector<16x1xf32>
    %22 = vector.broadcast %21 : vector<16x1xf32> to vector<16x128xf32>
    %23 = arith.subf %15, %22 : vector<16x128xf32>
    %24 = arith.mulf %23, %23 : vector<16x128xf32>
    %cst_17 = arith.constant dense<0.000000e+00> : vector<16xf32>
    %25 = vector.multi_reduction <add>, %24, %cst_17 [1] : vector<16x128xf32> to vector<16xf32>
    %26 = vector.shape_cast %25 : vector<16xf32> to vector<16x1xf32>
    %cst_18 = arith.constant 1.280000e+02 : f32
    %27 = vector.broadcast %cst_18 : f32 to vector<16x1xf32>
    %28 = arith.divf %26, %27 : vector<16x1xf32>
    %29 = vector.broadcast %21 : vector<16x1xf32> to vector<16x128xf32>
    %30 = arith.subf %15, %29 : vector<16x128xf32>
    %cst_19 = arith.constant 9.99999974E-6 : f32
    %31 = vector.broadcast %cst_19 : f32 to vector<16x1xf32>
    %32 = arith.addf %28, %31 : vector<16x1xf32>
    %33 = math.rsqrt %32 : vector<16x1xf32>
    %34 = vector.broadcast %33 : vector<16x1xf32> to vector<16x128xf32>
    %35 = arith.mulf %30, %34 : vector<16x128xf32>
    %36 = vector.broadcast %16 : vector<1x128xf32> to vector<16x128xf32>
    %37 = arith.mulf %35, %36 : vector<16x128xf32>
    %38 = vector.broadcast %17 : vector<1x128xf32> to vector<16x128xf32>
    %39 = arith.addf %37, %38 : vector<16x128xf32>
    %c0_20 = arith.constant 0 : index
    %c0_21 = arith.constant 0 : index
    %40 = vector.load %arg8[%c0_20, %c0_21] : memref<16x128xf32, #tpu.memory_space<vmem>>, vector<16x128xf32>
    tpu.vector_store %arg8[%c0_20, %c0_21], %39 {strides = array<i32>} : memref<16x128xf32, #tpu.memory_space<vmem>>, vector<16x128xf32>,
    return
  }
  func.func @transform_0(%arg0: i32) -> (i32, i32) {
    %c0_i32 = arith.constant 0 : i32
    %c0_i32_0 = arith.constant 0 : i32
    return %arg0, %c0_i32 : i32, i32
  }
  func.func @transform_1(%arg0: i32) -> (i32, i32) {
    %c0_i32 = arith.constant 0 : i32
    %c0_i32_0 = arith.constant 0 : i32
    %c0_i32_1 = arith.constant 0 : i32
    return %c0_i32, %c0_i32_0 : i32, i32
  }
  func.func @transform_2(%arg0: i32) -> (i32, i32) {
    %c0_i32 = arith.constant 0 : i32
    %c0_i32_0 = arith.constant 0 : i32
    %c0_i32_1 = arith.constant 0 : i32
    return %c0_i32, %c0_i32_0 : i32, i32
  }
  func.func @transform_3(%arg0: i32) -> (i32, i32) {
    %c0_i32 = arith.constant 0 : i32
    %c0_i32_0 = arith.constant 0 : i32
    %c0_i32_1 = arith.constant 0 : i32
    return %c0_i32, %c0_i32_0 : i32, i32
  }
  func.func @transform_4(%arg0: i32) -> (i32, i32) {
    %c0_i32 = arith.constant 0 : i32
    %c0_i32_0 = arith.constant 0 : i32
    %c0_i32_1 = arith.constant 0 : i32
    return %c0_i32, %c0_i32_0 : i32, i32
  }
  func.func @transform_5(%arg0: i32) -> (i32, i32) {
    %c0_i32 = arith.constant 0 : i32
    %c0_i32_0 = arith.constant 0 : i32
    %c0_i32_1 = arith.constant 0 : i32
    return %c0_i32, %c0_i32_0 : i32, i32
  }
  func.func @transform_6(%arg0: i32) -> (i32, i32) {
    %c0_i32 = arith.constant 0 : i32
    %c0_i32_0 = arith.constant 0 : i32
    %c0_i32_1 = arith.constant 0 : i32
    return %c0_i32, %c0_i32_0 : i32, i32
  }
  func.func @transform_7(%arg0: i32) -> (i32, i32) {
    %c0_i32 = arith.constant 0 : i32
    %c0_i32_0 = arith.constant 0 : i32
    return %arg0, %c0_i32 : i32, i32
  }
}

module attributes {stable_mosaic.version = 11 : i64} {
  func.func @attention_kernel(%arg0: i32, %arg1: memref<2xi32, #tpu.memory_space<smem>>, %arg2: memref<1x8x128xf32, #tpu.memory_space<vmem>>, %arg3: memref<1x8x128xf32, #tpu.memory_space<vmem>>, %arg4: memref<1x8x128xf32, #tpu.memory_space<vmem>>, %arg5: memref<1x8x128xf32, #tpu.memory_space<vmem>>) attributes {dimension_semantics = [#tpu.dimension_semantics<parallel>], iteration_bounds = array<i64: 2>, scalar_prefetch = 1 : i64, scratch_operands = 0 : i64, tpu.core_type = #tpu.core_type<tc>, window_params = [{transform_indices = @transform_0, window_bounds = array<i64: 1, 8, 128>}, {transform_indices = @transform_1, window_bounds = array<i64: 1, 8, 128>}, {transform_indices = @transform_2, window_bounds = array<i64: 1, 8, 128>}, {transform_indices = @transform_3, window_bounds = array<i64: 1, 8, 128>}]} {
    %0 = arith.index_cast %arg0 : i32 to index
    %1 = memref.load %arg1[%0] : memref<2xi32, #tpu.memory_space<smem>>
    %c0 = arith.constant 0 : index
    %c0_0 = arith.constant 0 : index
    %c0_1 = arith.constant 0 : index
    %2 = vector.load %arg2[%c0, %c0_0, %c0_1] : memref<1x8x128xf32, #tpu.memory_space<vmem>>, vector<1x8x128xf32>
    %3 = vector.shape_cast %2 : vector<1x8x128xf32> to vector<8x128xf32>
    %c0_2 = arith.constant 0 : index
    %c0_3 = arith.constant 0 : index
    %c0_4 = arith.constant 0 : index
    %4 = vector.load %arg3[%c0_2, %c0_3, %c0_4] : memref<1x8x128xf32, #tpu.memory_space<vmem>>, vector<1x8x128xf32>
    %5 = vector.shape_cast %4 : vector<1x8x128xf32> to vector<8x128xf32>
    %c0_5 = arith.constant 0 : index
    %c0_6 = arith.constant 0 : index
    %c0_7 = arith.constant 0 : index
    %6 = vector.load %arg4[%c0_5, %c0_6, %c0_7] : memref<1x8x128xf32, #tpu.memory_space<vmem>>, vector<1x8x128xf32>
    %7 = vector.shape_cast %6 : vector<1x8x128xf32> to vector<8x128xf32>
    %8 = tpu.iota {dimensions = array<i32: 1>} : vector<8x8xi32>
    %9 = vector.broadcast %1 : i32 to vector<8x8xi32>
    %10 = arith.cmpi slt, %8, %9 : vector<8x8xi32>
    %11 = vector.extract_strided_slice %3 {offsets = [0, 0], sizes = [8, 64], strides = [1, 1]} : vector<8x128xf32> to vector<8x64xf32>
    %12 = arith.truncf %11 : vector<8x64xf32> to vector<8x64xbf16>
    %13 = vector.extract_strided_slice %5 {offsets = [0, 0], sizes = [8, 64], strides = [1, 1]} : vector<8x128xf32> to vector<8x64xf32>
    %14 = arith.truncf %13 : vector<8x64xf32> to vector<8x64xbf16>
    %15 = vector.extract_strided_slice %7 {offsets = [0, 0], sizes = [8, 64], strides = [1, 1]} : vector<8x128xf32> to vector<8x64xf32>
    %16 = arith.truncf %15 : vector<8x64xf32> to vector<8x64xbf16>
    %cst = arith.constant dense<0.000000e+00> : vector<8x8xf32>
    %17 = tpu.matmul %12, %14, %cst {dimension_numbers = #tpu.dot_dimension_numbers<[1], [1], [0], [0], [0, 0, 1, 0], [], []>} : vector<8x64xbf16>, vector<8x64xbf16>, vector<8x8xf32> -> vector<8x8xf32>
    %cst_8 = arith.constant 1.250000e-01 : f32
    %18 = vector.broadcast %cst_8 : f32 to vector<8x8xf32>
    %19 = arith.mulf %17, %18 : vector<8x8xf32>
    %cst_9 = arith.constant -1.000000e+06 : f32
    %20 = vector.broadcast %cst_9 : f32 to vector<8x8xf32>
    %21 = arith.select %10, %19, %20 : vector<8x8xi1>, vector<8x8xf32>
    %cst_10 = arith.constant dense<0xFF800000> : vector<8xf32>
    %22 = vector.multi_reduction <maximumf>, %21, %cst_10 [1] : vector<8x8xf32> to vector<8xf32>
    %23 = vector.shape_cast %22 : vector<8xf32> to vector<8x1xf32>
    %24 = vector.broadcast %23 : vector<8x1xf32> to vector<8x8xf32>
    %25 = arith.subf %21, %24 : vector<8x8xf32>
    %26 = math.exp %25 : vector<8x8xf32>
    %cst_11 = arith.constant dense<0.000000e+00> : vector<8xf32>
    %27 = vector.multi_reduction <add>, %26, %cst_11 [1] : vector<8x8xf32> to vector<8xf32>
    %28 = vector.shape_cast %27 : vector<8xf32> to vector<8x1xf32>
    %29 = tpu.reciprocal %28 {approx = true} : vector<8x1xf32> -> vector<8x1xf32>
    %30 = vector.broadcast %29 : vector<8x1xf32> to vector<8x8xf32>
    %31 = arith.mulf %26, %30 : vector<8x8xf32>
    %32 = arith.truncf %31 : vector<8x8xf32> to vector<8x8xbf16>
    %cst_12 = arith.constant dense<0.000000e+00> : vector<8x64xf32>
    %33 = tpu.matmul %32, %16, %cst_12 {dimension_numbers = #tpu.dot_dimension_numbers<[1], [0], [0], [1], [0, 0, 1, 1], [], []>} : vector<8x8xbf16>, vector<8x64xbf16>, vector<8x64xf32> -> vector<8x64xf32>
    %34 = vector.extract_strided_slice %3 {offsets = [0, 64], sizes = [8, 64], strides = [1, 1]} : vector<8x128xf32> to vector<8x64xf32>
    %35 = arith.truncf %34 : vector<8x64xf32> to vector<8x64xbf16>
    %36 = vector.extract_strided_slice %5 {offsets = [0, 64], sizes = [8, 64], strides = [1, 1]} : vector<8x128xf32> to vector<8x64xf32>
    %37 = arith.truncf %36 : vector<8x64xf32> to vector<8x64xbf16>
    %38 = vector.extract_strided_slice %7 {offsets = [0, 64], sizes = [8, 64], strides = [1, 1]} : vector<8x128xf32> to vector<8x64xf32>
    %39 = arith.truncf %38 : vector<8x64xf32> to vector<8x64xbf16>
    %cst_13 = arith.constant dense<0.000000e+00> : vector<8x8xf32>
    %40 = tpu.matmul %35, %37, %cst_13 {dimension_numbers = #tpu.dot_dimension_numbers<[1], [1], [0], [0], [0, 0, 1, 0], [], []>} : vector<8x64xbf16>, vector<8x64xbf16>, vector<8x8xf32> -> vector<8x8xf32>
    %cst_14 = arith.constant 1.250000e-01 : f32
    %41 = vector.broadcast %cst_14 : f32 to vector<8x8xf32>
    %42 = arith.mulf %40, %41 : vector<8x8xf32>
    %cst_15 = arith.constant -1.000000e+06 : f32
    %43 = vector.broadcast %cst_15 : f32 to vector<8x8xf32>
    %44 = arith.select %10, %42, %43 : vector<8x8xi1>, vector<8x8xf32>
    %cst_16 = arith.constant dense<0xFF800000> : vector<8xf32>
    %45 = vector.multi_reduction <maximumf>, %44, %cst_16 [1] : vector<8x8xf32> to vector<8xf32>
    %46 = vector.shape_cast %45 : vector<8xf32> to vector<8x1xf32>
    %47 = vector.broadcast %46 : vector<8x1xf32> to vector<8x8xf32>
    %48 = arith.subf %44, %47 : vector<8x8xf32>
    %49 = math.exp %48 : vector<8x8xf32>
    %cst_17 = arith.constant dense<0.000000e+00> : vector<8xf32>
    %50 = vector.multi_reduction <add>, %49, %cst_17 [1] : vector<8x8xf32> to vector<8xf32>
    %51 = vector.shape_cast %50 : vector<8xf32> to vector<8x1xf32>
    %52 = tpu.reciprocal %51 {approx = true} : vector<8x1xf32> -> vector<8x1xf32>
    %53 = vector.broadcast %52 : vector<8x1xf32> to vector<8x8xf32>
    %54 = arith.mulf %49, %53 : vector<8x8xf32>
    %55 = arith.truncf %54 : vector<8x8xf32> to vector<8x8xbf16>
    %cst_18 = arith.constant dense<0.000000e+00> : vector<8x64xf32>
    %56 = tpu.matmul %55, %39, %cst_18 {dimension_numbers = #tpu.dot_dimension_numbers<[1], [0], [0], [1], [0, 0, 1, 1], [], []>} : vector<8x8xbf16>, vector<8x64xbf16>, vector<8x64xf32> -> vector<8x64xf32>
    %57 = tpu.concatenate %33, %56 in 1 : vector<8x64xf32>, vector<8x64xf32> -> vector<8x128xf32>
    %c0_19 = arith.constant 0 : index
    %c0_20 = arith.constant 0 : index
    %c0_21 = arith.constant 0 : index
    %58 = vector.load %arg5[%c0_19, %c0_20, %c0_21] : memref<1x8x128xf32, #tpu.memory_space<vmem>>, vector<1x8x128xf32>
    %59 = vector.shape_cast %58 : vector<1x8x128xf32> to vector<8x128xf32>
    %60 = vector.shape_cast %57 : vector<8x128xf32> to vector<1x8x128xf32>
    tpu.vector_store %arg5[%c0_19, %c0_20, %c0_21], %60 {strides = array<i32>} : memref<1x8x128xf32, #tpu.memory_space<vmem>>, vector<1x8x128xf32>,
    return
  }
  func.func @transform_0(%arg0: i32, %arg1: memref<2xi32, #tpu.memory_space<smem>>) -> (i32, i32, i32) {
    %c0_i32 = arith.constant 0 : i32
    %c0_i32_0 = arith.constant 0 : i32
    %c0_i32_1 = arith.constant 0 : i32
    return %arg0, %c0_i32, %c0_i32_0 : i32, i32, i32
  }
  func.func @transform_1(%arg0: i32, %arg1: memref<2xi32, #tpu.memory_space<smem>>) -> (i32, i32, i32) {
    %c0_i32 = arith.constant 0 : i32
    %c0_i32_0 = arith.constant 0 : i32
    %c0_i32_1 = arith.constant 0 : i32
    return %arg0, %c0_i32, %c0_i32_0 : i32, i32, i32
  }
  func.func @transform_2(%arg0: i32, %arg1: memref<2xi32, #tpu.memory_space<smem>>) -> (i32, i32, i32) {
    %c0_i32 = arith.constant 0 : i32
    %c0_i32_0 = arith.constant 0 : i32
    %c0_i32_1 = arith.constant 0 : i32
    return %arg0, %c0_i32, %c0_i32_0 : i32, i32, i32
  }
  func.func @transform_3(%arg0: i32, %arg1: memref<2xi32, #tpu.memory_space<smem>>) -> (i32, i32, i32) {
    %c0_i32 = arith.constant 0 : i32
    %c0_i32_0 = arith.constant 0 : i32
    %c0_i32_1 = arith.constant 0 : i32
    return %arg0, %c0_i32, %c0_i32_0 : i32, i32, i32
  }
}

module attributes {stable_mosaic.version = 11 : i64} {
  func.func @linear_kernel(%arg0: i32, %arg1: i32, %arg2: i32, %arg3: memref<16x128xf32, #tpu.memory_space<vmem>>, %arg4: memref<128x128xbf16, #tpu.memory_space<vmem>>, %arg5: memref<1x128xf32, #tpu.memory_space<vmem>>, %arg6: memref<16x128xf32, #tpu.memory_space<vmem>>, %arg7: memref<16x128xf32, #tpu.memory_space<vmem>>) attributes {dimension_semantics = [#tpu.dimension_semantics<parallel>, #tpu.dimension_semantics<parallel>, #tpu.dimension_semantics<arbitrary>], iteration_bounds = array<i64: 1, 3, 1>, scalar_prefetch = 0 : i64, scratch_operands = 1 : i64, tpu.core_type = #tpu.core_type<tc>, window_params = [{transform_indices = @transform_0, window_bounds = array<i64: 16, 128>}, {transform_indices = @transform_1, window_bounds = array<i64: 128, 128>}, {transform_indices = @transform_2, window_bounds = array<i64: 1, 128>}, {transform_indices = @transform_3, window_bounds = array<i64: 16, 128>}]} {
    %c0_i32 = arith.constant 0 : i32
    %0 = arith.cmpi eq, %arg2, %c0_i32 : i32
    %1 = arith.extui %0 : i1 to i32
    %c0_i32_0 = arith.constant 0 : i32
    %2 = arith.cmpi ne, %1, %c0_i32_0 : i32
    scf.if %2 {
      %cst_10 = arith.constant 0.000000e+00 : f32
      %13 = vector.broadcast %cst_10 : f32 to vector<16x128xf32>
      %c0_11 = arith.constant 0 : index
      %c0_12 = arith.constant 0 : index
      %14 = vector.load %arg7[%c0_11, %c0_12] : memref<16x128xf32, #tpu.memory_space<vmem>>, vector<16x128xf32>
      tpu.vector_store %arg7[%c0_11, %c0_12], %13 {strides = array<i32>} : memref<16x128xf32, #tpu.memory_space<vmem>>, vector<16x128xf32>,
    } else {
    }
    %c0 = arith.constant 0 : index
    %c0_1 = arith.constant 0 : index
    %3 = vector.load %arg7[%c0, %c0_1] : memref<16x128xf32, #tpu.memory_space<vmem>>, vector<16x128xf32>
    %c0_2 = arith.constant 0 : index
    %c0_3 = arith.constant 0 : index
    %4 = vector.load %arg3[%c0_2, %c0_3] : memref<16x128xf32, #tpu.memory_space<vmem>>, vector<16x128xf32>
    %5 = arith.truncf %4 : vector<16x128xf32> to vector<16x128xbf16>
    %c0_4 = arith.constant 0 : index
    %c0_5 = arith.constant 0 : index
    %6 = vector.load %arg4[%c0_4, %c0_5] : memref<128x128xbf16, #tpu.memory_space<vmem>>, vector<128x128xbf16>
    %cst = arith.constant dense<0.000000e+00> : vector<16x128xf32>
    %7 = tpu.matmul %5, %6, %cst {dimension_numbers = #tpu.dot_dimension_numbers<[1], [0], [0], [1], [0, 0, 1, 1], [], []>} : vector<16x128xbf16>, vector<128x128xbf16>, vector<16x128xf32> -> vector<16x128xf32>
    %8 = arith.addf %3, %7 : vector<16x128xf32>
    %c0_6 = arith.constant 0 : index
    %c0_7 = arith.constant 0 : index
    %9 = vector.load %arg7[%c0_6, %c0_7] : memref<16x128xf32, #tpu.memory_space<vmem>>, vector<16x128xf32>
    tpu.vector_store %arg7[%c0_6, %c0_7], %8 {strides = array<i32>} : memref<16x128xf32, #tpu.memory_space<vmem>>, vector<16x128xf32>,
    %c0_i32_8 = arith.constant 0 : i32
    %10 = arith.cmpi eq, %arg2, %c0_i32_8 : i32
    %11 = arith.extui %10 : i1 to i32
    %c0_i32_9 = arith.constant 0 : i32
    %12 = arith.cmpi ne, %11, %c0_i32_9 : i32
    scf.if %12 {
      %c0_10 = arith.constant 0 : index
      %c0_11 = arith.constant 0 : index
      %13 = vector.load %arg7[%c0_10, %c0_11] : memref<16x128xf32, #tpu.memory_space<vmem>>, vector<16x128xf32>
      %c0_12 = arith.constant 0 : index
      %c0_13 = arith.constant 0 : index
      %14 = vector.load %arg5[%c0_12, %c0_13] : memref<1x128xf32, #tpu.memory_space<vmem>>, vector<1x128xf32>
      %15 = vector.broadcast %14 : vector<1x128xf32> to vector<16x128xf32>
      %16 = arith.addf %13, %15 : vector<16x128xf32>
      %c0_14 = arith.constant 0 : index
      %c0_15 = arith.constant 0 : index
      %17 = vector.load %arg6[%c0_14, %c0_15] : memref<16x128xf32, #tpu.memory_space<vmem>>, vector<16x128xf32>
      tpu.vector_store %arg6[%c0_14, %c0_15], %16 {strides = array<i32>} : memref<16x128xf32, #tpu.memory_space<vmem>>, vector<16x128xf32>,
    } else {
    }
    return
  }
  func.func @transform_0(%arg0: i32, %arg1: i32, %arg2: i32) -> (i32, i32) {
    %c0_i32 = arith.constant 0 : i32
    return %arg0, %arg2 : i32, i32
  }
  func.func @transform_1(%arg0: i32, %arg1: i32, %arg2: i32) -> (i32, i32) {
    %c0_i32 = arith.constant 0 : i32
    return %arg2, %arg1 : i32, i32
  }
  func.func @transform_2(%arg0: i32, %arg1: i32, %arg2: i32) -> (i32, i32) {
    %c0_i32 = arith.constant 0 : i32
    %c0_i32_0 = arith.constant 0 : i32
    return %c0_i32, %arg1 : i32, i32
  }
  func.func @transform_3(%arg0: i32, %arg1: i32, %arg2: i32) -> (i32, i32) {
    %c0_i32 = arith.constant 0 : i32
    return %arg0, %arg1 : i32, i32
  }
}

module attributes {stable_mosaic.version = 11 : i64} {
  func.func @kernel(%arg0: i32, %arg1: i32, %arg2: memref<16x128xf32, #tpu.memory_space<vmem>>, %arg3: memref<128x128xbf16, #tpu.memory_space<vmem>>, %arg4: memref<1x128xf32, #tpu.memory_space<vmem>>, %arg5: memref<16x128xf32, #tpu.memory_space<vmem>>, %arg6: memref<1x128xf32, #tpu.memory_space<vmem>>, %arg7: memref<1x128xf32, #tpu.memory_space<vmem>>, %arg8: memref<16x128xf32, #tpu.memory_space<vmem>>, %arg9: memref<16x128xf32, #tpu.memory_space<vmem>>) attributes {dimension_semantics = [#tpu.dimension_semantics<parallel>, #tpu.dimension_semantics<arbitrary>], iteration_bounds = array<i64: 1, 1>, scalar_prefetch = 0 : i64, scratch_operands = 1 : i64, tpu.core_type = #tpu.core_type<tc>, window_params = [{transform_indices = @transform_0, window_bounds = array<i64: 16, 128>}, {transform_indices = @transform_1, window_bounds = array<i64: 128, 128>}, {pipeline_mode = #tpu.pipeline_mode<synchronous>, transform_indices = @transform_2, window_bounds = array<i64: 1, 128>}, {transform_indices = @transform_3, window_bounds = array<i64: 16, 128>}, {pipeline_mode = #tpu.pipeline_mode<synchronous>, transform_indices = @transform_4, window_bounds = array<i64: 1, 128>}, {pipeline_mode = #tpu.pipeline_mode<synchronous>, transform_indices = @transform_5, window_bounds = array<i64: 1, 128>}, {transform_indices = @transform_6, window_bounds = array<i64: 16, 128>}]} {
    %c0_i32 = arith.constant 0 : i32
    %0 = arith.cmpi eq, %arg1, %c0_i32 : i32
    %1 = arith.extui %0 : i1 to i32
    %c0_i32_0 = arith.constant 0 : i32
    %2 = arith.cmpi ne, %1, %c0_i32_0 : i32
    scf.if %2 {
      %cst_10 = arith.constant 0.000000e+00 : f32
      %13 = vector.broadcast %cst_10 : f32 to vector<16x128xf32>
      %c0_11 = arith.constant 0 : index
      %c0_12 = arith.constant 0 : index
      %14 = vector.load %arg9[%c0_11, %c0_12] : memref<16x128xf32, #tpu.memory_space<vmem>>, vector<16x128xf32>
      tpu.vector_store %arg9[%c0_11, %c0_12], %13 {strides = array<i32>} : memref<16x128xf32, #tpu.memory_space<vmem>>, vector<16x128xf32>,
    } else {
    }
    %c0 = arith.constant 0 : index
    %c0_1 = arith.constant 0 : index
    %3 = vector.load %arg9[%c0, %c0_1] : memref<16x128xf32, #tpu.memory_space<vmem>>, vector<16x128xf32>
    %c0_2 = arith.constant 0 : index
    %c0_3 = arith.constant 0 : index
    %4 = vector.load %arg2[%c0_2, %c0_3] : memref<16x128xf32, #tpu.memory_space<vmem>>, vector<16x128xf32>
    %5 = arith.truncf %4 : vector<16x128xf32> to vector<16x128xbf16>
    %c0_4 = arith.constant 0 : index
    %c0_5 = arith.constant 0 : index
    %6 = vector.load %arg3[%c0_4, %c0_5] : memref<128x128xbf16, #tpu.memory_space<vmem>>, vector<128x128xbf16>
    %cst = arith.constant dense<0.000000e+00> : vector<16x128xf32>
    %7 = tpu.matmul %5, %6, %cst {dimension_numbers = #tpu.dot_dimension_numbers<[1], [0], [0], [1], [0, 0, 1, 1], [], []>} : vector<16x128xbf16>, vector<128x128xbf16>, vector<16x128xf32> -> vector<16x128xf32>
    %8 = arith.addf %3, %7 : vector<16x128xf32>
    %c0_6 = arith.constant 0 : index
    %c0_7 = arith.constant 0 : index
    %9 = vector.load %arg9[%c0_6, %c0_7] : memref<16x128xf32, #tpu.memory_space<vmem>>, vector<16x128xf32>
    tpu.vector_store %arg9[%c0_6, %c0_7], %8 {strides = array<i32>} : memref<16x128xf32, #tpu.memory_space<vmem>>, vector<16x128xf32>,
    %c0_i32_8 = arith.constant 0 : i32
    %10 = arith.cmpi eq, %arg1, %c0_i32_8 : i32
    %11 = arith.extui %10 : i1 to i32
    %c0_i32_9 = arith.constant 0 : i32
    %12 = arith.cmpi ne, %11, %c0_i32_9 : i32
    scf.if %12 {
      %c0_10 = arith.constant 0 : index
      %c0_11 = arith.constant 0 : index
      %13 = vector.load %arg9[%c0_10, %c0_11] : memref<16x128xf32, #tpu.memory_space<vmem>>, vector<16x128xf32>
      %c0_12 = arith.constant 0 : index
      %c0_13 = arith.constant 0 : index
      %14 = vector.load %arg4[%c0_12, %c0_13] : memref<1x128xf32, #tpu.memory_space<vmem>>, vector<1x128xf32>
      %c0_14 = arith.constant 0 : index
      %c0_15 = arith.constant 0 : index
      %15 = vector.load %arg5[%c0_14, %c0_15] : memref<16x128xf32, #tpu.memory_space<vmem>>, vector<16x128xf32>
      %c0_16 = arith.constant 0 : index
      %c0_17 = arith.constant 0 : index
      %16 = vector.load %arg6[%c0_16, %c0_17] : memref<1x128xf32, #tpu.memory_space<vmem>>, vector<1x128xf32>
      %c0_18 = arith.constant 0 : index
      %c0_19 = arith.constant 0 : index
      %17 = vector.load %arg7[%c0_18, %c0_19] : memref<1x128xf32, #tpu.memory_space<vmem>>, vector<1x128xf32>
      %18 = vector.broadcast %14 : vector<1x128xf32> to vector<16x128xf32>
      %19 = arith.addf %13, %18 : vector<16x128xf32>
      %20 = arith.addf %19, %15 : vector<16x128xf32>
      %cst_20 = arith.constant dense<0.000000e+00> : vector<16xf32>
      %21 = vector.multi_reduction <add>, %20, %cst_20 [1] : vector<16x128xf32> to vector<16xf32>
      %22 = vector.shape_cast %21 : vector<16xf32> to vector<16x1xf32>
      %cst_21 = arith.constant 1.280000e+02 : f32
      %23 = vector.broadcast %cst_21 : f32 to vector<16x1xf32>
      %24 = arith.divf %22, %23 : vector<16x1xf32>
      %25 = vector.broadcast %24 : vector<16x1xf32> to vector<16x128xf32>
      %26 = arith.subf %20, %25 : vector<16x128xf32>
      %27 = arith.mulf %26, %26 : vector<16x128xf32>
      %cst_22 = arith.constant dense<0.000000e+00> : vector<16xf32>
      %28 = vector.multi_reduction <add>, %27, %cst_22 [1] : vector<16x128xf32> to vector<16xf32>
      %29 = vector.shape_cast %28 : vector<16xf32> to vector<16x1xf32>
      %cst_23 = arith.constant 1.280000e+02 : f32
      %30 = vector.broadcast %cst_23 : f32 to vector<16x1xf32>
      %31 = arith.divf %29, %30 : vector<16x1xf32>
      %32 = vector.broadcast %24 : vector<16x1xf32> to vector<16x128xf32>
      %33 = arith.subf %20, %32 : vector<16x128xf32>
      %cst_24 = arith.constant 9.99999974E-6 : f32
      %34 = vector.broadcast %cst_24 : f32 to vector<16x1xf32>
      %35 = arith.addf %31, %34 : vector<16x1xf32>
      %36 = math.rsqrt %35 : vector<16x1xf32>
      %37 = vector.broadcast %36 : vector<16x1xf32> to vector<16x128xf32>
      %38 = arith.mulf %33, %37 : vector<16x128xf32>
      %39 = vector.broadcast %16 : vector<1x128xf32> to vector<16x128xf32>
      %40 = arith.mulf %38, %39 : vector<16x128xf32>
      %41 = vector.broadcast %17 : vector<1x128xf32> to vector<16x128xf32>
      %42 = arith.addf %40, %41 : vector<16x128xf32>
      %c0_25 = arith.constant 0 : index
      %c0_26 = arith.constant 0 : index
      %43 = vector.load %arg8[%c0_25, %c0_26] : memref<16x128xf32, #tpu.memory_space<vmem>>, vector<16x128xf32>
      tpu.vector_store %arg8[%c0_25, %c0_26], %42 {strides = array<i32>} : memref<16x128xf32, #tpu.memory_space<vmem>>, vector<16x128xf32>,
    } else {
    }
    return
  }
  func.func @transform_0(%arg0: i32, %arg1: i32) -> (i32, i32) {
    %c0_i32 = arith.constant 0 : i32
    return %arg0, %arg1 : i32, i32
  }
  func.func @transform_1(%arg0: i32, %arg1: i32) -> (i32, i32) {
    %c0_i32 = arith.constant 0 : i32
    %c0_i32_0 = arith.constant 0 : i32
    return %arg1, %c0_i32 : i32, i32
  }
  func.func @transform_2(%arg0: i32, %arg1: i32) -> (i32, i32) {
    %c0_i32 = arith.constant 0 : i32
    %c0_i32_0 = arith.constant 0 : i32
    %c0_i32_1 = arith.constant 0 : i32
    return %c0_i32, %c0_i32_0 : i32, i32
  }
  func.func @transform_3(%arg0: i32, %arg1: i32) -> (i32, i32) {
    %c0_i32 = arith.constant 0 : i32
    %c0_i32_0 = arith.constant 0 : i32
    return %arg0, %c0_i32 : i32, i32
  }
  func.func @transform_4(%arg0: i32, %arg1: i32) -> (i32, i32) {
    %c0_i32 = arith.constant 0 : i32
    %c0_i32_0 = arith.constant 0 : i32
    %c0_i32_1 = arith.constant 0 : i32
    return %c0_i32, %c0_i32_0 : i32, i32
  }
  func.func @transform_5(%arg0: i32, %arg1: i32) -> (i32, i32) {
    %c0_i32 = arith.constant 0 : i32
    %c0_i32_0 = arith.constant 0 : i32
    %c0_i32_1 = arith.constant 0 : i32
    return %c0_i32, %c0_i32_0 : i32, i32
  }
  func.func @transform_6(%arg0: i32, %arg1: i32) -> (i32, i32) {
    %c0_i32 = arith.constant 0 : i32
    %c0_i32_0 = arith.constant 0 : i32
    return %arg0, %c0_i32 : i32, i32
  }
}

module attributes {stable_mosaic.version = 11 : i64} {
  func.func @linear_kernel(%arg0: i32, %arg1: i32, %arg2: i32, %arg3: memref<6x128xf32, #tpu.memory_space<vmem>>, %arg4: memref<128x256xbf16, #tpu.memory_space<vmem>>, %arg5: memref<1x256xf32, #tpu.memory_space<vmem>>, %arg6: memref<6x256xf32, #tpu.memory_space<vmem>>, %arg7: memref<6x256xf32, #tpu.memory_space<vmem>>) attributes {dimension_semantics = [#tpu.dimension_semantics<parallel>, #tpu.dimension_semantics<parallel>, #tpu.dimension_semantics<arbitrary>], iteration_bounds = array<i64: 1, 1, 1>, scalar_prefetch = 0 : i64, scratch_operands = 1 : i64, tpu.core_type = #tpu.core_type<tc>, window_params = [{transform_indices = @transform_0, window_bounds = array<i64: 6, 128>}, {transform_indices = @transform_1, window_bounds = array<i64: 128, 256>}, {transform_indices = @transform_2, window_bounds = array<i64: 1, 256>}, {transform_indices = @transform_3, window_bounds = array<i64: 6, 256>}]} {
    %c0_i32 = arith.constant 0 : i32
    %0 = arith.cmpi eq, %arg2, %c0_i32 : i32
    %1 = arith.extui %0 : i1 to i32
    %c0_i32_0 = arith.constant 0 : i32
    %2 = arith.cmpi ne, %1, %c0_i32_0 : i32
    scf.if %2 {
      %cst_10 = arith.constant 0.000000e+00 : f32
      %13 = vector.broadcast %cst_10 : f32 to vector<6x256xf32>
      %c0_11 = arith.constant 0 : index
      %c0_12 = arith.constant 0 : index
      %14 = vector.load %arg7[%c0_11, %c0_12] : memref<6x256xf32, #tpu.memory_space<vmem>>, vector<6x256xf32>
      tpu.vector_store %arg7[%c0_11, %c0_12], %13 {strides = array<i32>} : memref<6x256xf32, #tpu.memory_space<vmem>>, vector<6x256xf32>,
    } else {
    }
    %c0 = arith.constant 0 : index
    %c0_1 = arith.constant 0 : index
    %3 = vector.load %arg7[%c0, %c0_1] : memref<6x256xf32, #tpu.memory_space<vmem>>, vector<6x256xf32>
    %c0_2 = arith.constant 0 : index
    %c0_3 = arith.constant 0 : index
    %4 = vector.load %arg3[%c0_2, %c0_3] : memref<6x128xf32, #tpu.memory_space<vmem>>, vector<6x128xf32>
    %5 = arith.truncf %4 : vector<6x128xf32> to vector<6x128xbf16>
    %c0_4 = arith.constant 0 : index
    %c0_5 = arith.constant 0 : index
    %6 = vector.load %arg4[%c0_4, %c0_5] : memref<128x256xbf16, #tpu.memory_space<vmem>>, vector<128x256xbf16>
    %cst = arith.constant dense<0.000000e+00> : vector<6x256xf32>
    %7 = tpu.matmul %5, %6, %cst {dimension_numbers = #tpu.dot_dimension_numbers<[1], [0], [0], [1], [0, 0, 1, 1], [], []>} : vector<6x128xbf16>, vector<128x256xbf16>, vector<6x256xf32> -> vector<6x256xf32>
    %8 = arith.addf %3, %7 : vector<6x256xf32>
    %c0_6 = arith.constant 0 : index
    %c0_7 = arith.constant 0 : index
    %9 = vector.load %arg7[%c0_6, %c0_7] : memref<6x256xf32, #tpu.memory_space<vmem>>, vector<6x256xf32>
    tpu.vector_store %arg7[%c0_6, %c0_7], %8 {strides = array<i32>} : memref<6x256xf32, #tpu.memory_space<vmem>>, vector<6x256xf32>,
    %c0_i32_8 = arith.constant 0 : i32
    %10 = arith.cmpi eq, %arg2, %c0_i32_8 : i32
    %11 = arith.extui %10 : i1 to i32
    %c0_i32_9 = arith.constant 0 : i32
    %12 = arith.cmpi ne, %11, %c0_i32_9 : i32
    scf.if %12 {
      %c0_10 = arith.constant 0 : index
      %c0_11 = arith.constant 0 : index
      %13 = vector.load %arg7[%c0_10, %c0_11] : memref<6x256xf32, #tpu.memory_space<vmem>>, vector<6x256xf32>
      %c0_12 = arith.constant 0 : index
      %c0_13 = arith.constant 0 : index
      %14 = vector.load %arg5[%c0_12, %c0_13] : memref<1x256xf32, #tpu.memory_space<vmem>>, vector<1x256xf32>
      %15 = vector.broadcast %14 : vector<1x256xf32> to vector<6x256xf32>
      %16 = arith.addf %13, %15 : vector<6x256xf32>
      %c0_14 = arith.constant 0 : index
      %c0_15 = arith.constant 0 : index
      %17 = vector.load %arg6[%c0_14, %c0_15] : memref<6x256xf32, #tpu.memory_space<vmem>>, vector<6x256xf32>
      tpu.vector_store %arg6[%c0_14, %c0_15], %16 {strides = array<i32>} : memref<6x256xf32, #tpu.memory_space<vmem>>, vector<6x256xf32>,
    } else {
    }
    return
  }
  func.func @transform_0(%arg0: i32, %arg1: i32, %arg2: i32) -> (i32, i32) {
    %c0_i32 = arith.constant 0 : i32
    return %arg0, %arg2 : i32, i32
  }
  func.func @transform_1(%arg0: i32, %arg1: i32, %arg2: i32) -> (i32, i32) {
    %c0_i32 = arith.constant 0 : i32
    return %arg2, %arg1 : i32, i32
  }
  func.func @transform_2(%arg0: i32, %arg1: i32, %arg2: i32) -> (i32, i32) {
    %c0_i32 = arith.constant 0 : i32
    %c0_i32_0 = arith.constant 0 : i32
    return %c0_i32, %arg1 : i32, i32
  }
  func.func @transform_3(%arg0: i32, %arg1: i32, %arg2: i32) -> (i32, i32) {
    %c0_i32 = arith.constant 0 : i32
    return %arg0, %arg1 : i32, i32
  }
}

module attributes {stable_mosaic.version = 11 : i64} {
  func.func @kernel(%arg0: i32, %arg1: i32, %arg2: memref<6x128xf32, #tpu.memory_space<vmem>>, %arg3: memref<128x128xbf16, #tpu.memory_space<vmem>>, %arg4: memref<1x128xf32, #tpu.memory_space<vmem>>, %arg5: memref<1x128xf32, #tpu.memory_space<vmem>>, %arg6: memref<1x128xf32, #tpu.memory_space<vmem>>, %arg7: memref<6x128xf32, #tpu.memory_space<vmem>>, %arg8: memref<6x128xf32, #tpu.memory_space<vmem>>) attributes {dimension_semantics = [#tpu.dimension_semantics<parallel>, #tpu.dimension_semantics<arbitrary>], iteration_bounds = array<i64: 1, 1>, scalar_prefetch = 0 : i64, scratch_operands = 1 : i64, tpu.core_type = #tpu.core_type<tc>, window_params = [{transform_indices = @transform_0, window_bounds = array<i64: 6, 128>}, {transform_indices = @transform_1, window_bounds = array<i64: 128, 128>}, {pipeline_mode = #tpu.pipeline_mode<synchronous>, transform_indices = @transform_2, window_bounds = array<i64: 1, 128>}, {pipeline_mode = #tpu.pipeline_mode<synchronous>, transform_indices = @transform_3, window_bounds = array<i64: 1, 128>}, {pipeline_mode = #tpu.pipeline_mode<synchronous>, transform_indices = @transform_4, window_bounds = array<i64: 1, 128>}, {transform_indices = @transform_5, window_bounds = array<i64: 6, 128>}]} {
    %c0_i32 = arith.constant 0 : i32
    %0 = arith.cmpi eq, %arg1, %c0_i32 : i32
    %1 = arith.extui %0 : i1 to i32
    %c0_i32_0 = arith.constant 0 : i32
    %2 = arith.cmpi ne, %1, %c0_i32_0 : i32
    scf.if %2 {
      %cst_10 = arith.constant 0.000000e+00 : f32
      %13 = vector.broadcast %cst_10 : f32 to vector<6x128xf32>
      %c0_11 = arith.constant 0 : index
      %c0_12 = arith.constant 0 : index
      %14 = vector.load %arg8[%c0_11, %c0_12] : memref<6x128xf32, #tpu.memory_space<vmem>>, vector<6x128xf32>
      tpu.vector_store %arg8[%c0_11, %c0_12], %13 {strides = array<i32>} : memref<6x128xf32, #tpu.memory_space<vmem>>, vector<6x128xf32>,
    } else {
    }
    %c0 = arith.constant 0 : index
    %c0_1 = arith.constant 0 : index
    %3 = vector.load %arg8[%c0, %c0_1] : memref<6x128xf32, #tpu.memory_space<vmem>>, vector<6x128xf32>
    %c0_2 = arith.constant 0 : index
    %c0_3 = arith.constant 0 : index
    %4 = vector.load %arg2[%c0_2, %c0_3] : memref<6x128xf32, #tpu.memory_space<vmem>>, vector<6x128xf32>
    %5 = arith.truncf %4 : vector<6x128xf32> to vector<6x128xbf16>
    %c0_4 = arith.constant 0 : index
    %c0_5 = arith.constant 0 : index
    %6 = vector.load %arg3[%c0_4, %c0_5] : memref<128x128xbf16, #tpu.memory_space<vmem>>, vector<128x128xbf16>
    %cst = arith.constant dense<0.000000e+00> : vector<6x128xf32>
    %7 = tpu.matmul %5, %6, %cst {dimension_numbers = #tpu.dot_dimension_numbers<[1], [0], [0], [1], [0, 0, 1, 1], [], []>} : vector<6x128xbf16>, vector<128x128xbf16>, vector<6x128xf32> -> vector<6x128xf32>
    %8 = arith.addf %3, %7 : vector<6x128xf32>
    %c0_6 = arith.constant 0 : index
    %c0_7 = arith.constant 0 : index
    %9 = vector.load %arg8[%c0_6, %c0_7] : memref<6x128xf32, #tpu.memory_space<vmem>>, vector<6x128xf32>
    tpu.vector_store %arg8[%c0_6, %c0_7], %8 {strides = array<i32>} : memref<6x128xf32, #tpu.memory_space<vmem>>, vector<6x128xf32>,
    %c0_i32_8 = arith.constant 0 : i32
    %10 = arith.cmpi eq, %arg1, %c0_i32_8 : i32
    %11 = arith.extui %10 : i1 to i32
    %c0_i32_9 = arith.constant 0 : i32
    %12 = arith.cmpi ne, %11, %c0_i32_9 : i32
    scf.if %12 {
      %c0_10 = arith.constant 0 : index
      %c0_11 = arith.constant 0 : index
      %13 = vector.load %arg8[%c0_10, %c0_11] : memref<6x128xf32, #tpu.memory_space<vmem>>, vector<6x128xf32>
      %c0_12 = arith.constant 0 : index
      %c0_13 = arith.constant 0 : index
      %14 = vector.load %arg4[%c0_12, %c0_13] : memref<1x128xf32, #tpu.memory_space<vmem>>, vector<1x128xf32>
      %c0_14 = arith.constant 0 : index
      %c0_15 = arith.constant 0 : index
      %15 = vector.load %arg5[%c0_14, %c0_15] : memref<1x128xf32, #tpu.memory_space<vmem>>, vector<1x128xf32>
      %c0_16 = arith.constant 0 : index
      %c0_17 = arith.constant 0 : index
      %16 = vector.load %arg6[%c0_16, %c0_17] : memref<1x128xf32, #tpu.memory_space<vmem>>, vector<1x128xf32>
      %17 = vector.broadcast %14 : vector<1x128xf32> to vector<6x128xf32>
      %18 = arith.addf %13, %17 : vector<6x128xf32>
      %cst_18 = arith.constant 0.000000e+00 : f32
      %19 = vector.broadcast %cst_18 : f32 to vector<6x128xf32>
      %20 = arith.maximumf %18, %19 : vector<6x128xf32>
      %cst_19 = arith.constant dense<0.000000e+00> : vector<6xf32>
      %21 = vector.multi_reduction <add>, %20, %cst_19 [1] : vector<6x128xf32> to vector<6xf32>
      %22 = vector.shape_cast %21 : vector<6xf32> to vector<6x1xf32>
      %cst_20 = arith.constant 1.280000e+02 : f32
      %23 = vector.broadcast %cst_20 : f32 to vector<6x1xf32>
      %24 = arith.divf %22, %23 : vector<6x1xf32>
      %25 = vector.broadcast %24 : vector<6x1xf32> to vector<6x128xf32>
      %26 = arith.subf %20, %25 : vector<6x128xf32>
      %27 = arith.mulf %26, %26 : vector<6x128xf32>
      %cst_21 = arith.constant dense<0.000000e+00> : vector<6xf32>
      %28 = vector.multi_reduction <add>, %27, %cst_21 [1] : vector<6x128xf32> to vector<6xf32>
      %29 = vector.shape_cast %28 : vector<6xf32> to vector<6x1xf32>
      %cst_22 = arith.constant 1.280000e+02 : f32
      %30 = vector.broadcast %cst_22 : f32 to vector<6x1xf32>
      %31 = arith.divf %29, %30 : vector<6x1xf32>
      %32 = vector.broadcast %24 : vector<6x1xf32> to vector<6x128xf32>
      %33 = arith.subf %20, %32 : vector<6x128xf32>
      %cst_23 = arith.constant 9.99999974E-6 : f32
      %34 = vector.broadcast %cst_23 : f32 to vector<6x1xf32>
      %35 = arith.addf %31, %34 : vector<6x1xf32>
      %36 = math.rsqrt %35 : vector<6x1xf32>
      %37 = vector.broadcast %36 : vector<6x1xf32> to vector<6x128xf32>
      %38 = arith.mulf %33, %37 : vector<6x128xf32>
      %39 = vector.broadcast %15 : vector<1x128xf32> to vector<6x128xf32>
      %40 = arith.mulf %38, %39 : vector<6x128xf32>
      %41 = vector.broadcast %16 : vector<1x128xf32> to vector<6x128xf32>
      %42 = arith.addf %40, %41 : vector<6x128xf32>
      %c0_24 = arith.constant 0 : index
      %c0_25 = arith.constant 0 : index
      %43 = vector.load %arg7[%c0_24, %c0_25] : memref<6x128xf32, #tpu.memory_space<vmem>>, vector<6x128xf32>
      tpu.vector_store %arg7[%c0_24, %c0_25], %42 {strides = array<i32>} : memref<6x128xf32, #tpu.memory_space<vmem>>, vector<6x128xf32>,
    } else {
    }
    return
  }
  func.func @transform_0(%arg0: i32, %arg1: i32) -> (i32, i32) {
    %c0_i32 = arith.constant 0 : i32
    return %arg0, %arg1 : i32, i32
  }
  func.func @transform_1(%arg0: i32, %arg1: i32) -> (i32, i32) {
    %c0_i32 = arith.constant 0 : i32
    %c0_i32_0 = arith.constant 0 : i32
    return %arg1, %c0_i32 : i32, i32
  }
  func.func @transform_2(%arg0: i32, %arg1: i32) -> (i32, i32) {
    %c0_i32 = arith.constant 0 : i32
    %c0_i32_0 = arith.constant 0 : i32
    %c0_i32_1 = arith.constant 0 : i32
    return %c0_i32, %c0_i32_0 : i32, i32
  }
  func.func @transform_3(%arg0: i32, %arg1: i32) -> (i32, i32) {
    %c0_i32 = arith.constant 0 : i32
    %c0_i32_0 = arith.constant 0 : i32
    %c0_i32_1 = arith.constant 0 : i32
    return %c0_i32, %c0_i32_0 : i32, i32
  }
  func.func @transform_4(%arg0: i32, %arg1: i32) -> (i32, i32) {
    %c0_i32 = arith.constant 0 : i32
    %c0_i32_0 = arith.constant 0 : i32
    %c0_i32_1 = arith.constant 0 : i32
    return %c0_i32, %c0_i32_0 : i32, i32
  }
  func.func @transform_5(%arg0: i32, %arg1: i32) -> (i32, i32) {
    %c0_i32 = arith.constant 0 : i32
    %c0_i32_0 = arith.constant 0 : i32
    return %arg0, %c0_i32 : i32, i32
  }
}

</mosaic_0001>

<bundles_post_ra>
// kernel: _lambda_.10
= control target key start
LH: loop header
LB: loop body
LE: loop exit
PB: predicated region body
PF: predicated region fallthrough
CT: control target
= control target key end

     0   :  { %s789_s12 = smov 0   ;;  %s791_s13 = smov 0   ;;  %s894_s0 = inlined_call_operand.vmem [shape: f32[16,128], index: 0, kind: input, shape index: {}]   ;;  %s895_s1 = inlined_call_operand.vmem [shape: bf16[128,384], index: 1, kind: input, shape index: {}]   ;;  %s896_s2 = inlined_call_operand.vmem [shape: f32[1,384], index: 2, kind: input, shape index: {}]   ;;  %s897_s3 = inlined_call_operand.vmem [shape: f32[16,384], index: 3, kind: output, shape index: {}]  }
   0x1   :  { %s793_s14 = smov 0   ;;  %s795_s15 = smov 0  }
   0x2   :  { %s797_s16 = smov 0  }
   0x3 LB: > { %s28_s17 = sadd.s32 1, %s761_s15  ;;  %s625_s18 = sadd.s32 4294967295, %s765_s16   ;;  %s765_s16 = sphi %s797_s16, %s13_s16   ;;  %s761_s15 = sphi %s795_s15, %s902_s15   ;;  %s757_s14 = sphi %s793_s14, %s901_s14   ;;  %s753_s13 = sphi %s791_s13, %s900_s13   ;;  %s749_s12 = sphi %s789_s12, %s899_s12  }
   0x4   : > { %p30_p0 = scmp.ge.s32.totalorder %s28_s17, 3  ;;  %p76_p1 = scmp.ne.s32.totalorder %s753_s13, %s749_s12 }
   0x5   : > { %p77_p2 = scmp.eq.s32.totalorder %s765_s16, 0  ;;  %p134_p4 = scmp.eq.s32.totalorder %s625_s18, 2 }
   0x6   : > { %s904_s17 = smov (%p30_p0, %s28_s17), 0  ;;  %s69_s20 = sadd.s32 1, %s753_s13 }
   0x7   : > { %p78_p3 = por %p77_p2, %p76_p1  ;;  %s65_s19 = ssub.s32 %s761_s15, %s904_s17 }
   0x8   : > { %p67_p5 = scmp.eq.s32.totalorder %s65_s19, 0  ;;  %p824_p6 = por %p134_p4, %p76_p1 }
   0x9   : > { %p629_p7 = scmp.ge.s32.totalorder %s765_s16, 3 }
   0xa   : > { %s829_s22 = scalar_select %p67_p5, %s753_s13, %s69_s20  }
   0xb   : > { %168 = sbr.rel (%p629_p7) target bundleno = 32 (0x20), region = 20 }
  0x12   : > { %171 = sbr.rel (!%p78_p3) target bundleno = 32 (0x20), region = 24  ;;  %s173_s23 = sand.u32 (%p78_p3), 1, %s753_s13  }
  0x13   : > { %s631_s24 = sshll.u32 (%p78_p3), %s761_s15, 2  ;;  %s630_s25 = sshll.u32 (%p78_p3), %s173_s23, 6 }
  0x14   : > { %s837_s28 = scalar_lea.vmem (%p78_p3), %s895_s1, %s631_s24  ;;  %s175_s29 = scalar_lea.vmem (%p78_p3), [#allocation3], %s630_s25 }
  0x15   : > { %v196_v0 = vld [vmem:[%s837_s28] sm:$0xf] (%p78_p3)  ;;  %v198_v1 = vld [vmem:[%s837_s28 + $0xc] sm:$0xf] (%p78_p3)  ;;  %v200_v2 = vld [vmem:[%s837_s28 + $0x18] sm:$0xf] (%p78_p3) }
  0x16   : > { %197 = vst [vmem:[%s175_s29] sm:$0xf] (%p78_p3), %v196_v0  ;;  %199 = vst [vmem:[%s175_s29 + $0x4] sm:$0xf] (%p78_p3), %v198_v1  ;;  %v202_v3 = vld [vmem:[%s837_s28 + $0x24] sm:$0xf] (%p78_p3) }
  0x17   : > { %v204_v4 = vld [vmem:[%s837_s28 + $0x30] sm:$0xf] (%p78_p3)  ;;  %201 = vst [vmem:[%s175_s29 + $0x8] sm:$0xf] (%p78_p3), %v200_v2  ;;  %203 = vst [vmem:[%s175_s29 + $0xc] sm:$0xf] (%p78_p3), %v202_v3 }
  0x18   : > { %205 = vst [vmem:[%s175_s29 + $0x10] sm:$0xf] (%p78_p3), %v204_v4  ;;  %v206_v5 = vld [vmem:[%s837_s28 + $0x3c] sm:$0xf] (%p78_p3)  ;;  %v208_v6 = vld [vmem:[%s837_s28 + $0x48] sm:$0xf] (%p78_p3) }
  0x19   : > { %v210_v7 = vld [vmem:[%s837_s28 + $0x54] sm:$0xf]  ;;  %207 = vst [vmem:[%s175_s29 + $0x14] sm:$0xf] %v206_v5  ;;  %209 = vst [vmem:[%s175_s29 + $0x18] sm:$0xf] %v208_v6 }
  0x1a   : > { %211 = vst [vmem:[%s175_s29 + $0x1c] sm:$0xf] %v210_v7  ;;  %v212_v8 = vld [vmem:[%s837_s28 + $0x60] sm:$0xf]  ;;  %v214_v9 = vld [vmem:[%s837_s28 + $0x6c] sm:$0xf] }
  0x1b   : > { %v216_v10 = vld [vmem:[%s837_s28 + $0x78] sm:$0xf]  ;;  %213 = vst [vmem:[%s175_s29 + $0x20] sm:$0xf] %v212_v8  ;;  %215 = vst [vmem:[%s175_s29 + $0x24] sm:$0xf] %v214_v9 }
  0x1c   : > { %217 = vst [vmem:[%s175_s29 + $0x28] sm:$0xf] %v216_v10  ;;  %v218_v11 = vld [vmem:[%s837_s28 + $0x84] sm:$0xf]  ;;  %v220_v12 = vld [vmem:[%s837_s28 + $0x90] sm:$0xf] }
  0x1d   : > { %v222_v13 = vld [vmem:[%s837_s28 + $0x9c] sm:$0xf]  ;;  %219 = vst [vmem:[%s175_s29 + $0x2c] sm:$0xf] %v218_v11  ;;  %221 = vst [vmem:[%s175_s29 + $0x30] sm:$0xf] %v220_v12 }
  0x1e   : > { %223 = vst [vmem:[%s175_s29 + $0x34] sm:$0xf] %v222_v13  ;;  %v224_v14 = vld [vmem:[%s837_s28 + $0xa8] sm:$0xf]  ;;  %v226_v15 = vld [vmem:[%s837_s28 + $0xb4] sm:$0xf] }
  0x1f   : > { %225 = vst [vmem:[%s175_s29 + $0x38] sm:$0xf] %v224_v14  ;;  %227 = vst [vmem:[%s175_s29 + $0x3c] sm:$0xf] %v226_v15 }
  0x20 PF: > { %p632_p8 = scmp.ge.s32.totalorder %s765_s16, 1  ;;  %p287_p9 = scmp.lt.s32.totalorder %s765_s16, 4 }
  0x22   : > { %p288_p10 = pnand %p632_p8, %p287_p9 }
  0x23   : > { %s294_s30 = sand.u32 (!%p288_p10), 1, %s749_s12   ;;  %v767_v16 = vmov (!%p288_p10), 0.0   ;;  %vm768_vm0 = vmmov (!%p288_p10), 0   ;;  %v350_v25 = vld [vmem:[%s894_s0] sm:$0xff] (!%p288_p10)  ;;  %v351_v26 = vld [vmem:[%s894_s0 + $0x8] sm:$0xff] (!%p288_p10)  ;;  %p337_p11 = scmp.lt.s32.totalorder (!%p288_p10), %s757_s14, 2 }
  0x24   : > { %291 = sbr.rel (%p288_p10) target bundleno = 295 (0x127), region = 69  ;;  %657 = vmatprep.subr.bf16.mxu0 (!%p288_p10), %v767_v16  ;;  %s633_s4 = sshll.u32 (!%p288_p10), %s294_s30, 6  ;;  %673 = vmatprep.mubr.msk.bf16.mxu0 (!%p288_p10), %vm768_vm0, %v767_v16  ;;  %v352_v27 = vpack.c.bf16 (!%p288_p10), %v351_v26, %v350_v25 }
  0x25   : > { %s296_s5 = scalar_lea.vmem (!%p288_p10), [#allocation3], %s633_s4  ;;  %s634_s20 = sshll.u32 (!%p288_p10), %s294_s30, 4 }
  0x26   : > { %v719_v17 = vld [vmem:[%s296_s5] sm:$0xff] (!%p288_p10)   ;;  %v720_v18 = vld [vmem:[%s296_s5 + $0x8] sm:$0xff] (!%p288_p10)   ;;  %v721_v19 = vld [vmem:[%s296_s5 + $0x10] sm:$0xff] (!%p288_p10)   ;;  %s326_s23 = scalar_lea.vmem (!%p288_p10), [#allocation4], %s634_s20 }
  0x27   : > { %658 = vmatpush3.bf16.msra.mxu0 (!%p288_p10), %v719_v17  ;;  %v722_v20 = vld [vmem:[%s296_s5 + $0x18] sm:$0xff] (!%p288_p10)   ;;  %v723_v21 = vld [vmem:[%s296_s5 + $0x20] sm:$0xff] (!%p288_p10)   ;;  %v724_v22 = vld [vmem:[%s296_s5 + $0x28] sm:$0xff] (!%p288_p10)  }
  0x28   : > { %659 = vmatprep.subr.bf16.mxu0 (!%p288_p10), %v767_v16  ;;  %v725_v23 = vld [vmem:[%s296_s5 + $0x30] sm:$0xff] (!%p288_p10)   ;;  %v726_v24 = vld [vmem:[%s296_s5 + $0x38] sm:$0xff] (!%p288_p10)  }
  0x2b   : > { %660 = vmatpush3.bf16.msra.mxu0 %v720_v18  ;;  %s338_s10 = scalar_select %p337_p11, %s757_s14, 2 }
  0x2c   : > { %661 = vmatprep.subr.bf16.mxu0 %v767_v16  ;;  %s645_s24 = sshll.u32 (%p824_p6), %s757_s14, 3 }
  0x2d   : > { %s339_s19 = scalar_lea.vmem %s896_s2, %s338_s10  ;;  %s489_s26 = scalar_lea.vmem (%p824_p6), %s897_s3, %s645_s24 }
  0x2e   : > { %v643_v28 = vld [vmem:[%s339_s19] ss:$0 sm:$0xff] }
  0x2f   : > { %662 = vmatpush3.bf16.msra.mxu0 %v721_v19 }
  0x30   : > { %663 = vmatprep.subr.bf16.mxu0 %v767_v16 }
  0x33   : > { %664 = vmatpush3.bf16.msra.mxu0 %v722_v20 }
  0x34   : > { %665 = vmatprep.subr.bf16.mxu0 %v767_v16 }
  0x37   : > { %666 = vmatpush3.bf16.msra.mxu0 %v723_v21 }
  0x38   : > { %667 = vmatprep.subr.bf16.mxu0 %v767_v16 }
  0x3b   : > { %668 = vmatpush3.bf16.msra.mxu0 %v724_v22 }
  0x3c   : > { %669 = vmatprep.subr.bf16.mxu0 %v767_v16 }
  0x3f   : > { %670 = vmatpush3.bf16.msra.mxu0 %v725_v23 }
  0x40   : > { %671 = vmatprep.subr.bf16.mxu0 %v767_v16 }
  0x43   : > { %672 = vmatpush3.bf16.msra.mxu0 %v726_v24 }
  0x46   : > { %674 = vmatmul.mubr.bf16.vlgmr.msra.gmra.mrb[0].mxu0 %v352_v27 }
 0x118   : > { %484 = sbr.rel (!%p824_p6) target bundleno = 295 (0x127), region = 85 }
 0x119   : > { %v451_v29 = vpop.f32.mrb[0].mxu0 }
 0x11a   : > { %v474_v30 = vadd.f32 %v643_v28, %v451_v29  ;;  %v675_v31 = vpop.f32.mrb[1].mxu0 }
 0x11b   : > { %v454_v32 = vpop.f32.mrb[2].mxu0 }
 0x11c   : > { %476 = vst [vmem:[%s326_s23] sm:$0xff] %v474_v30  ;;  %v475_v33 = vadd.f32 %v643_v28, %v454_v32  ;;  %v676_v34 = vpop.f32.mrb[3].mxu0 }
 0x11e   : > { %477 = vst [vmem:[%s326_s23 + $0x8] sm:$0xff] %v475_v33 }
 0x123   : > { %v519_v35 = vld [vmem:[%s326_s23] sm:$0xff] }
 0x124   : > { %520 = vst [vmem:[%s489_s26] sm:$0xff] %v519_v35 }
 0x125   : > { %v521_v36 = vld [vmem:[%s326_s23 + $0x8] sm:$0xff] }
 0x126   : > { %522 = vst [vmem:[%s489_s26 + $0x18] sm:$0xff] %v521_v36 }
 0x127 PF: > { %s13_s16 = sadd.s32 1, %s765_s16   ;;  %s899_s12 = smov %s753_s13 }
 0x128   : > { %p10_p12 = scmp.ge.s32.totalorder %s13_s16, 5   ;;  %s900_s13 = smov %s829_s22 }
 0x129   : > { %s901_s14 = smov %s761_s15  ;;  %s902_s15 = smov %s904_s17 }
 0x12a   :  { %12 = sbr.rel (!%p10_p12) target bundleno = 3 (0x3), region = 160 }

// kernel: _lambda_.11
= control target key start
LH: loop header
LB: loop body
LE: loop exit
PB: predicated region body
PF: predicated region fallthrough
CT: control target
= control target key end

     0   :  { %s705_s0 = inlined_call_operand.vmem [shape: s32[2], index: 0, kind: input, shape index: {}]   ;;  %s706_s1 = inlined_call_operand.vmem [shape: f32[2,8,128], index: 1, kind: input, shape index: {}]   ;;  %s707_s2 = inlined_call_operand.vmem [shape: f32[2,8,128], index: 2, kind: input, shape index: {}]   ;;  %s708_s3 = inlined_call_operand.vmem [shape: f32[2,8,128], index: 3, kind: input, shape index: {}]   ;;  %s709_s4 = inlined_call_operand.vmem [shape: f32[2,8,128], index: 4, kind: output, shape index: {}]  }
   0x1   :  { %s9_s17 = sshll.u32 %s705_s0, 4  ;;  %s10_s17 = int_to_ptr.vmem [resolvable:$true] %s9_s17 }
   0x2   :  { %s593_s18 = scalar_lea.vmem %s10_s17, 16  ;;  %p598_p1 = scmp.lt.s32.totalorder %s10_s17, %s10_s17 }
   0x3   :  { %p594_p0 = scmp.ne.s32.totalorder %s10_s17, %s593_s18  ;;  %p599_p2 = scmp.lt.s32.totalorder %s593_s18, %s593_s18 }
   0x5   :  { %p600_p3 = por %p599_p2, %p598_p1 }
   0x7   :  { %p601_p4 = pnand %p600_p3, %p594_p0 }
   0x9   :  { %604 = shalt.err (!%p601_p4)  }
   0xa   :  { %s615_s19 = smov [#allocation3]  }
   0xb   :  { %12 = dma.vmem_to_smem %s10_s17, 16, %s615_s19, [#allocation2] }
   0xc   :  { %609 = dma.done.wait [#allocation2], 16 }
   0xd   :  { %610 = vsyncadd [#allocation2], 4294967280 }
   0xe   :  { %14 = sfence }
   0xf   :  { %s647_s20 = smov 0  }
  0x10 LB: > { %s526_s0 = sadd.s32 4294967295, %s613_s20   ;;  %p530_p5 = scmp.ge.s32.totalorder %s613_s20, 1  ;;  %s613_s20 = sphi %s647_s20, %s20_s20  }
  0x11   : > { %p161_p6 = scmp.lt.s32.totalorder %s613_s20, 3 }
  0x13   : > { %p162_p7 = pnand %p530_p5, %p161_p6 }
  0x14   : > { %p191_p8 = scmp.lt.s32.totalorder (!%p162_p7), %s526_s0, 1  ;;  %v616_v0 = vmov (!%p162_p7), 0.0   ;;  %vm617_vm0 = vmmov (!%p162_p7), 0   ;;  %vm219_vm1 = vcmask (!%p162_p7), 523264   ;;  %s208_s29 = sld [smem:[#allocation3 + %s526_s0]] (!%p162_p7)  ;;  %v212_v6 = vlaneseq (!%p162_p7) }
  0x15   : > { %165 = sbr.rel (%p162_p7) target bundleno = 1442 (0x5a2), region = 32  ;;  %549 = vmatprep.subr.bf16.mxu0 (!%p162_p7), %v616_v0  ;;  %551 = vmatprep.mubr.msk.bf16.mxu0 (!%p162_p7), %vm617_vm0, %v616_v0  ;;  %vm268_vm3 = vcmask (!%p162_p7), 64512   ;;  %s618_s30 = smov (!%p162_p7), 64   ;;  %vm284_vm4 = vcmask (!%p162_p7), 1043456  }
  0x16   : > { %555 = vmatprep.subr.bf16.mxu1 (!%p162_p7), %v616_v0  ;;  %557 = vmatprep.mubr.msk.bf16.mxu1 (!%p162_p7), %vm617_vm0, %v616_v0  ;;  %v213_v7 = vand.u32 (!%p162_p7), 127, %v212_v6 }
  0x1a   : > { %v214_v8 = vstv (!%p162_p7), %s208_s29 }
  0x1b   : > { %vm670_vm2 = vcmp.lt.s32.totalorder (!%p162_p7), %v213_v7, %v214_v8 }
  0x1c   : > { %s192_s21 = scalar_select %p191_p8, %s526_s0, 1 }
  0x1e   : > { %s657_s22 = sshll.u32 %s192_s21, 3 }
  0x1f   : > { %s198_s25 = scalar_lea.vmem %s707_s2, %s657_s22  ;;  %s194_s28 = scalar_lea.vmem %s706_s1, %s657_s22 }
  0x20   : > { %v210_v1 = vld [vmem:[%s198_s25] sm:$0xff]  ;;  %s202_s7 = scalar_lea.vmem %s708_s3, %s657_s22  ;;  %s206_s10 = scalar_lea.vmem %s709_s4, %s657_s22 }
  0x21   : > { %v217_v2 = vpack.c.bf16 %v210_v1, %v210_v1  ;;  %v209_v4 = vld [vmem:[%s194_s28] sm:$0xff] }
  0x22   : > { %v216_v5 = vpack.c.bf16 %v209_v4, %v209_v4  ;;  %v211_v22 = vld [vmem:[%s202_s7] sm:$0xff] }
  0x23   : > { %v224_v3 = vsel %vm219_vm1, %v217_v2, 0  ;;  %332 = vrot.lane.b32.xlu1 %v217_v2, %s618_s30  ;;  %v218_v23 = vpack.c.bf16 %v211_v22, %v211_v22 }
  0x24   : > { %550 = vmatpush3.bf16.xpose.msra.mxu0 %v224_v3 }
  0x25   : > { %567 = vmatprep.subr.bf16.mxu0 %v616_v0  ;;  %v286_v24 = vsel %vm284_vm4, %v218_v23, 0 }
  0x26   : > { %556 = vmatpush3.bf16.msra.mxu1 %v286_v24 }
  0x27   : > { %329 = vrot.lane.b32.xlu1 %v216_v5, %s618_s30  ;;  %561 = vmatprep.subr.bf16.mxu1 %v616_v0 }
  0x2b   : > { %552 = vmatmul.mubr.msk.bf16.vlgmr.msra.gmra.mrb[0].mxu0 %vm219_vm1, %v216_v5 }
  0x2c   : > { %569 = vmatprep.mubr.msk.bf16.mxu0 %vm617_vm0, %v616_v0 }
  0x95   : > { %v333_v27 = vpop.permute.xlu1 %332 }
  0x96   : > { %v338_v29 = vsel %vm219_vm1, %v333_v27, 0 }
  0x99   : > { %v330_v31 = vpop.permute.xlu1 %329 }
  0xfe   : > { %v260_v9 = vpop.f32.mrb[0].mxu0 }
  0xff   : > { %v266_v11 = vmul.f32 0.125, %v260_v9  ;;  %v553_v12 = vpop.f32.mrb[1].mxu0 }
 0x100   : > { %v263_v13 = vpop.f32.mrb[2].mxu0 }
 0x101   : > { %v554_v14 = vpop.f32.mrb[3].mxu0  ;;  %v267_v15 = vsel %vm670_vm2, %v266_v11, -1000000.0 }
 0x102   : > { %v269_v16 = vsel %vm268_vm3, %v267_v15, -inf }
 0x103   : > { %270 = vmax.xlane.f32.xlu0 %v269_v16 }
 0x190   : > { %v271_v17 = vpop.xlane.xlu0 %270 }
 0x191   : > { %v272_v18 = vsub.f32 %v267_v15, %v271_v17 }
 0x193   : > { %v273_v19 = vmul.f32 1.442695, %v272_v18 }
 0x195   : > { %585 = vpow2.f32 %v273_v19 }
 0x19f   : > { %v586_v20 = vpop.eup %585 }
 0x1a0   : > { %v275_v21 = vsel %vm268_vm3, %v586_v20, 0.0 }
 0x1a1   : > { %276 = vadd.xlane.f32.xlu0 %v275_v21 }
 0x22e   : > { %v277_v25 = vpop.xlane.xlu0 %276 }
 0x22f   : > { %587 = vrcp.f32 %v277_v25 }
 0x239   : > { %v588_v26 = vpop.eup %587 }
 0x23a   : > { %v279_v28 = vmul.f32 %v588_v26, %v586_v20 }
 0x23c   : > { %v280_v30 = vpack.c.bf16 %v279_v28, %v279_v28 }
 0x23e   : > { %558 = vmatmul.mubr.msk.bf16.vlgmr.msra.gmra.mrb[0].mxu1 %vm268_vm3, %v280_v30 }
 0x23f   : > { %562 = vmatpush3.bf16.xpose.msra.mxu1 %v338_v29  ;;  %563 = vmatprep.mubr.msk.bf16.mxu1 %vm617_vm0, %v616_v0 }
 0x246   : > { %564 = vmatmul.mubr.msk.bf16.vlgmr.msra.gmra.mrb[4].mxu1 %vm219_vm1, %v330_v31 }
 0x311   : > { %v322_v32 = vpop.f32.mrb[0].mxu1 }
 0x312   : > { %v559_v33 = vpop.f32.mrb[1].mxu1 }
 0x313   : > { %v325_v34 = vpop.f32.mrb[2].mxu1 }
 0x314   : > { %v560_v35 = vpop.f32.mrb[3].mxu1 }
 0x319   : > { %v374_v36 = vpop.f32.mrb[4].mxu1 }
 0x31a   : > { %v380_v37 = vmul.f32 0.125, %v374_v36  ;;  %v565_v38 = vpop.f32.mrb[5].mxu1 }
 0x31b   : > { %v377_v39 = vpop.f32.mrb[6].mxu1 }
 0x31c   : > { %v566_v40 = vpop.f32.mrb[7].mxu1  ;;  %v381_v41 = vsel %vm670_vm2, %v380_v37, -1000000.0 }
 0x31d   : > { %v382_v42 = vsel %vm268_vm3, %v381_v41, -inf }
 0x31e   : > { %383 = vmax.xlane.f32.xlu0 %v382_v42 }
 0x334   : > { %395 = vrot.lane.b32.xlu0 %v218_v23, %s618_s30 }
 0x3ab   : > { %v384_v43 = vpop.xlane.xlu0 %383 }
 0x3ac   : > { %v385_v44 = vsub.f32 %v381_v41, %v384_v43 }
 0x3ae   : > { %v386_v45 = vmul.f32 1.442695, %v385_v44 }
 0x3af   : > { %v396_v48 = vpop.permute.xlu0 %395 }
 0x3b0   : > { %589 = vpow2.f32 %v386_v45  ;;  %v401_v49 = vsel %vm284_vm4, %v396_v48, 0 }
 0x3b1   : > { %568 = vmatpush3.bf16.msra.mxu0 %v401_v49 }
 0x3ba   : > { %v590_v46 = vpop.eup %589 }
 0x3bb   : > { %v388_v47 = vsel %vm268_vm3, %v590_v46, 0.0 }
 0x3bc   : > { %389 = vadd.xlane.f32.xlu1 %v388_v47 }
 0x449   : > { %v390_v50 = vpop.xlane.xlu1 %389 }
 0x44a   : > { %591 = vrcp.f32 %v390_v50 }
 0x454   : > { %v592_v51 = vpop.eup %591 }
 0x455   : > { %v392_v52 = vmul.f32 %v592_v51, %v590_v46 }
 0x457   : > { %v393_v53 = vpack.c.bf16 %v392_v52, %v392_v52 }
 0x459   : > { %570 = vmatmul.mubr.msk.bf16.vlgmr.msra.gmra.mrb[4].mxu0 %vm268_vm3, %v393_v53 }
 0x52c   : > { %v437_v54 = vpop.f32.mrb[4].mxu0 }
 0x52d   : > { %444 = vrot.lane.b32.xlu0 %v437_v54, %s618_s30  ;;  %v571_v55 = vpop.f32.mrb[5].mxu0 }
 0x52e   : > { %v440_v56 = vpop.f32.mrb[6].mxu0 }
 0x52f   : > { %v572_v57 = vpop.f32.mrb[7].mxu0 }
 0x59f   : > { %v445_v58 = vpop.permute.xlu0 %444 }
 0x5a0   : > { %v447_v59 = vsel %vm219_vm1, %v322_v32, %v445_v58 }
 0x5a1   : > { %448 = vst [vmem:[%s206_s10] sm:$0xff] %v447_v59 }
 0x5a2 PF: > { %s20_s20 = sadd.s32 1, %s613_s20  }
 0x5a3   : > { %p17_p9 = scmp.ge.s32.totalorder %s20_s20, 4  }
 0x5a5   :  { %19 = sbr.rel (!%p17_p9) target bundleno = 16 (0x10), region = 68 }

// kernel: _lambda_.12
= control target key start
LH: loop header
LB: loop body
LE: loop exit
PB: predicated region body
PF: predicated region fallthrough
CT: control target
= control target key end

     0   :  { %v263_v0 = vmov 0.0   ;;  %vm264_vm0 = vmmov 0   ;;  %s351_s1 = inlined_call_operand.vmem [shape: bf16[128,128], index: 1, kind: input, shape index: {}]   ;;  %s352_s0 = inlined_call_operand.vmem [shape: f32[16,128], index: 0, kind: input, shape index: {}]   ;;  %s353_s2 = inlined_call_operand.vmem [shape: f32[1,128], index: 2, kind: input, shape index: {}]   ;;  %s354_s3 = inlined_call_operand.vmem [shape: f32[16,128], index: 3, kind: input, shape index: {}]   ;;  %s355_s4 = inlined_call_operand.vmem [shape: f32[1,128], index: 4, kind: input, shape index: {}]   ;;  %s356_s5 = inlined_call_operand.vmem [shape: f32[1,128], index: 5, kind: input, shape index: {}]   ;;  %s357_s6 = inlined_call_operand.vmem [shape: f32[16,128], index: 6, kind: output, shape index: {}]  }
   0x1   :  { %229 = vmatprep.subr.bf16.mxu0 %v263_v0  ;;  %v251_v1 = vld [vmem:[%s351_s1] sm:$0xff]   ;;  %245 = vmatprep.mubr.msk.bf16.mxu0 %vm264_vm0, %v263_v0  ;;  %v252_v2 = vld [vmem:[%s351_s1 + $0x8] sm:$0xff]   ;;  %v253_v3 = vld [vmem:[%s351_s1 + $0x10] sm:$0xff]  }
   0x2   :  { %230 = vmatpush3.bf16.msra.mxu0 %v251_v1  ;;  %v254_v4 = vld [vmem:[%s351_s1 + $0x18] sm:$0xff]   ;;  %v255_v5 = vld [vmem:[%s351_s1 + $0x20] sm:$0xff]   ;;  %v256_v6 = vld [vmem:[%s351_s1 + $0x28] sm:$0xff]  }
   0x3   :  { %231 = vmatprep.subr.bf16.mxu0 %v263_v0  ;;  %v257_v7 = vld [vmem:[%s351_s1 + $0x30] sm:$0xff]   ;;  %v258_v8 = vld [vmem:[%s351_s1 + $0x38] sm:$0xff]   ;;  %v32_v9 = vld [vmem:[%s352_s0] sm:$0xff] }
   0x4   :  { %v33_v10 = vld [vmem:[%s352_s0 + $0x8] sm:$0xff]  ;;  %v217_v12 = vld [vmem:[%s353_s2] ss:$0 sm:$0xff] }
   0x5   :  { %v34_v11 = vpack.c.bf16 %v33_v10, %v32_v9  ;;  %v150_v14 = vld [vmem:[%s354_s3] sm:$0xff]  ;;  %v151_v21 = vld [vmem:[%s354_s3 + $0x8] sm:$0xff] }
   0x6   :  { %232 = vmatpush3.bf16.msra.mxu0 %v252_v2  ;;  %v218_v38 = vld [vmem:[%s355_s4] ss:$0 sm:$0xff] }
   0x7   :  { %233 = vmatprep.subr.bf16.mxu0 %v263_v0  ;;  %v219_v40 = vld [vmem:[%s356_s5] ss:$0 sm:$0xff] }
   0xa   :  { %234 = vmatpush3.bf16.msra.mxu0 %v253_v3 }
   0xb   :  { %235 = vmatprep.subr.bf16.mxu0 %v263_v0 }
   0xe   :  { %236 = vmatpush3.bf16.msra.mxu0 %v254_v4 }
   0xf   :  { %237 = vmatprep.subr.bf16.mxu0 %v263_v0 }
  0x12   :  { %238 = vmatpush3.bf16.msra.mxu0 %v255_v5 }
  0x13   :  { %239 = vmatprep.subr.bf16.mxu0 %v263_v0 }
  0x16   :  { %240 = vmatpush3.bf16.msra.mxu0 %v256_v6 }
  0x17   :  { %241 = vmatprep.subr.bf16.mxu0 %v263_v0 }
  0x1a   :  { %242 = vmatpush3.bf16.msra.mxu0 %v257_v7 }
  0x1b   :  { %243 = vmatprep.subr.bf16.mxu0 %v263_v0 }
  0x1e   :  { %244 = vmatpush3.bf16.msra.mxu0 %v258_v8 }
  0x21   :  { %246 = vmatmul.mubr.bf16.vlgmr.msra.gmra.mrb[0].mxu0 %v34_v11 }
  0xf4   :  { %v133_v13 = vpop.f32.mrb[0].mxu0 }
  0xf5   :  { %v160_v15 = vadd.f32 %v217_v12, %v133_v13  ;;  %v247_v16 = vpop.f32.mrb[1].mxu0 }
  0xf6   :  { %v136_v17 = vpop.f32.mrb[2].mxu0 }
  0xf7   :  { %v161_v18 = vadd.f32 %v217_v12, %v136_v17  ;;  %v248_v19 = vpop.f32.mrb[3].mxu0  ;;  %v162_v20 = vadd.f32 %v160_v15, %v150_v14 }
  0xf9   :  { %164 = vadd.xlane.f32.xlu0 %v162_v20  ;;  %v163_v22 = vadd.f32 %v161_v18, %v151_v21 }
  0xfd   :  { %166 = vadd.xlane.f32.xlu0 %v163_v22 }
 0x186   :  { %v165_v23 = vpop.xlane.xlu0 %164 }
 0x187   :  { %v169_v24 = vmul.f32 0.0078125, %v165_v23 }
 0x189   :  { %v171_v25 = vsub.f32 %v162_v20, %v169_v24 }
 0x18a   :  { %v167_v26 = vpop.xlane.xlu0 %166 }
 0x18b   :  { %v170_v27 = vmul.f32 0.0078125, %v167_v26  ;;  %v173_v28 = vmul.f32 %v171_v25, %v171_v25 }
 0x18d   :  { %v172_v29 = vsub.f32 %v163_v22, %v170_v27  ;;  %175 = vadd.xlane.f32.xlu1 %v173_v28 }
 0x18f   :  { %v174_v30 = vmul.f32 %v172_v29, %v172_v29 }
 0x191   :  { %177 = vadd.xlane.f32.xlu1 %v174_v30 }
 0x21a   :  { %v176_v31 = vpop.xlane.xlu1 %175 }
 0x21b   :  { %v179_v32 = vmul.f32 0.0078125, %v176_v31 }
 0x21d   :  { %v181_v33 = vadd.f32 1e-05, %v179_v32 }
 0x21e   :  { %v178_v34 = vpop.xlane.xlu1 %177 }
 0x21f   :  { %259 = vrsqrt.f32 %v181_v33  ;;  %v180_v35 = vmul.f32 0.0078125, %v178_v34 }
 0x221   :  { %v182_v36 = vadd.f32 1e-05, %v180_v35 }
 0x223   :  { %261 = vrsqrt.f32 %v182_v36 }
 0x229   :  { %v260_v37 = vpop.eup %259 }
 0x22a   :  { %v185_v39 = vmul.f32 %v260_v37, %v171_v25 }
 0x22c   :  { %v193_v41 = vmul.f32 %v218_v38, %v185_v39 }
 0x22d   :  { %v262_v42 = vpop.eup %261 }
 0x22e   :  { %v201_v43 = vadd.f32 %v219_v40, %v193_v41  ;;  %v186_v44 = vmul.f32 %v262_v42, %v172_v29 }
 0x230   :  { %203 = vst [vmem:[%s357_s6] sm:$0xff] %v201_v43  ;;  %v194_v45 = vmul.f32 %v218_v38, %v186_v44 }
 0x232   :  { %v202_v46 = vadd.f32 %v219_v40, %v194_v45 }
 0x234   :  { %204 = vst [vmem:[%s357_s6 + $0x8] sm:$0xff] %v202_v46 }

// kernel: _lambda_.13
= control target key start
LH: loop header
LB: loop body
LE: loop exit
PB: predicated region body
PF: predicated region fallthrough
CT: control target
= control target key end

     0   :  { %v514_v1 = vmov 0   ;;  %v48_v36 = vlaneseq  ;;  %s675_s1 = inlined_call_operand.vmem [shape: bf16[128,256], index: 1, kind: input, shape index: {}]   ;;  %s676_s3 = inlined_call_operand.vmem [shape: bf16[256,128], index: 3, kind: input, shape index: {}]   ;;  %s677_s0 = inlined_call_operand.vmem [shape: f32[16,128], index: 0, kind: input, shape index: {}]   ;;  %s678_s2 = inlined_call_operand.vmem [shape: f32[1,256], index: 2, kind: input, shape index: {}]   ;;  %s679_s4 = inlined_call_operand.vmem [shape: f32[1,128], index: 4, kind: input, shape index: {}]   ;;  %s680_s5 = inlined_call_operand.vmem [shape: f32[1,128], index: 5, kind: input, shape index: {}]   ;;  %s681_s6 = inlined_call_operand.vmem [shape: f32[1,128], index: 6, kind: input, shape index: {}]   ;;  %s682_s7 = inlined_call_operand.vmem [shape: f32[16,128], index: 7, kind: output, shape index: {}]  }
   0x1   :  { %v470_v0 = vld [vmem:[%s675_s1 + $0x4] ss:$8 sps:$4 sm:$0xff]   ;;  %170 = vmatprep.mubr.bf16.mxu0 %v514_v1  ;;  %v472_v2 = vld [vmem:[%s675_s1] ss:$8 sps:$4 sm:$0xff]   ;;  %v473_v3 = vld [vmem:[%s675_s1 + $0x14] ss:$8 sps:$4 sm:$0xff]  }
   0x2   :  { %138 = vmatprep.subr.bf16.mxu0 %v470_v0  ;;  %v475_v4 = vld [vmem:[%s675_s1 + $0x10] ss:$8 sps:$4 sm:$0xff]   ;;  %v476_v5 = vld [vmem:[%s675_s1 + $0x24] ss:$8 sps:$4 sm:$0xff]   ;;  %v478_v6 = vld [vmem:[%s675_s1 + $0x20] ss:$8 sps:$4 sm:$0xff]  }
   0x3   :  { %139 = vmatpush1.bf16.msra.mxu0 %v472_v2  ;;  %v479_v7 = vld [vmem:[%s675_s1 + $0x34] ss:$8 sps:$4 sm:$0xff]   ;;  %v481_v8 = vld [vmem:[%s675_s1 + $0x30] ss:$8 sps:$4 sm:$0xff]   ;;  %v482_v9 = vld [vmem:[%s675_s1 + $0x44] ss:$8 sps:$4 sm:$0xff]  }
   0x4   :  { %140 = vmatprep.subr.bf16.mxu0 %v473_v3  ;;  %v494_v10 = vld [vmem:[%s676_s3 + $0x40] sm:$0xff]   ;;  %v485_v13 = vld [vmem:[%s675_s1 + $0x54] ss:$8 sps:$4 sm:$0xff]   ;;  %v496_v14 = vld [vmem:[%s676_s3 + $0x48] sm:$0xff]   ;;  %v49_v37 = vshrl.u32 %v48_v36, 7 }
   0x5   :  { %v484_v11 = vld [vmem:[%s675_s1 + $0x40] ss:$8 sps:$4 sm:$0xff]   ;;  %447 = vmatprep.subr.bf16.mxu1 %v494_v10  ;;  %v498_v16 = vld [vmem:[%s676_s3 + $0x50] sm:$0xff]   ;;  %v488_v18 = vld [vmem:[%s675_s1 + $0x64] ss:$8 sps:$4 sm:$0xff]  }
   0x6   :  { %v495_v12 = vld [vmem:[%s676_s3] sm:$0xff]   ;;  %v497_v15 = vld [vmem:[%s676_s3 + $0x8] sm:$0xff]   ;;  %v487_v17 = vld [vmem:[%s675_s1 + $0x50] ss:$8 sps:$4 sm:$0xff]   ;;  %v50_v38 = vsub.s32 0, %v49_v37  ;;  %v54_v40 = vsub.s32 1, %v49_v37 }
   0x7   :  { %141 = vmatpush1.bf16.msra.mxu0 %v475_v4  ;;  %448 = vmatpush3.bf16.msra.mxu1 %v495_v12  ;;  %v499_v19 = vld [vmem:[%s676_s3 + $0x10] sm:$0xff]   ;;  %v500_v20 = vld [vmem:[%s676_s3 + $0x58] sm:$0xff]   ;;  %v490_v21 = vld [vmem:[%s675_s1 + $0x60] ss:$8 sps:$4 sm:$0xff]  }
   0x8   :  { %142 = vmatprep.subr.bf16.mxu0 %v476_v5  ;;  %449 = vmatprep.subr.bf16.mxu1 %v496_v14  ;;  %v491_v22 = vld [vmem:[%s675_s1 + $0x74] ss:$8 sps:$4 sm:$0xff]   ;;  %v502_v24 = vld [vmem:[%s676_s3 + $0x60] sm:$0xff]   ;;  %v493_v25 = vld [vmem:[%s675_s1 + $0x70] ss:$8 sps:$4 sm:$0xff]  }
   0x9   :  { %v501_v23 = vld [vmem:[%s676_s3 + $0x18] sm:$0xff]   ;;  %v27_v26 = vld [vmem:[%s677_s0] sm:$0xff]  ;;  %v28_v27 = vld [vmem:[%s677_s0 + $0x8] sm:$0xff] }
   0xa   :  { %v503_v28 = vld [vmem:[%s676_s3 + $0x20] sm:$0xff]   ;;  %v504_v29 = vld [vmem:[%s676_s3 + $0x68] sm:$0xff]   ;;  %v29_v30 = vpack.c.bf16 %v28_v27, %v27_v26  ;;  %v506_v32 = vld [vmem:[%s676_s3 + $0x70] sm:$0xff]  }
   0xb   :  { %143 = vmatpush1.bf16.msra.mxu0 %v478_v6  ;;  %450 = vmatpush3.bf16.msra.mxu1 %v497_v15  ;;  %v505_v31 = vld [vmem:[%s676_s3 + $0x28] sm:$0xff]   ;;  %v507_v33 = vld [vmem:[%s676_s3 + $0x30] sm:$0xff]   ;;  %v508_v34 = vld [vmem:[%s676_s3 + $0x78] sm:$0xff]  }
   0xc   :  { %144 = vmatprep.subr.bf16.mxu0 %v479_v7  ;;  %451 = vmatprep.subr.bf16.mxu1 %v498_v16  ;;  %v509_v35 = vld [vmem:[%s676_s3 + $0x38] sm:$0xff]   ;;  %v46_v39 = vld [vmem:[%s678_s2] sm:$0x3] }
   0xd   :  { %v51_v41 = vrot.slane %v46_v39, %v50_v38  ;;  %v55_v42 = vrot.slane %v46_v39, %v54_v40  ;;  %v428_v58 = vld [vmem:[%s679_s4] ss:$0 sm:$0xff] }
   0xf   :  { %145 = vmatpush1.bf16.msra.mxu0 %v481_v8  ;;  %452 = vmatpush3.bf16.msra.mxu1 %v499_v19  ;;  %v445_v19 = vld [vmem:[%s680_s5] ss:$0 sm:$0xff] }
  0x10   :  { %146 = vmatprep.subr.bf16.mxu0 %v482_v9  ;;  %453 = vmatprep.subr.bf16.mxu1 %v500_v20 }
  0x13   :  { %147 = vmatpush1.bf16.msra.mxu0 %v484_v11  ;;  %454 = vmatpush3.bf16.msra.mxu1 %v501_v23 }
  0x14   :  { %148 = vmatprep.subr.bf16.mxu0 %v485_v13  ;;  %455 = vmatprep.subr.bf16.mxu1 %v502_v24 }
  0x17   :  { %149 = vmatpush1.bf16.msra.mxu0 %v487_v17  ;;  %456 = vmatpush3.bf16.msra.mxu1 %v503_v28 }
  0x18   :  { %150 = vmatprep.subr.bf16.mxu0 %v488_v18  ;;  %457 = vmatprep.subr.bf16.mxu1 %v504_v29 }
  0x1b   :  { %151 = vmatpush1.bf16.msra.mxu0 %v490_v21  ;;  %458 = vmatpush3.bf16.msra.mxu1 %v505_v31  ;;  %v446_v21 = vld [vmem:[%s681_s6] ss:$0 sm:$0xff] }
  0x1c   :  { %152 = vmatprep.subr.bf16.mxu0 %v491_v22  ;;  %459 = vmatprep.subr.bf16.mxu1 %v506_v32 }
  0x1f   :  { %153 = vmatpush1.bf16.msra.mxu0 %v493_v25  ;;  %460 = vmatpush3.bf16.msra.mxu1 %v507_v33 }
  0x20   :  { %461 = vmatprep.subr.bf16.mxu1 %v508_v34 }
  0x22   :  { %171 = vmatmul.mubr.bf16.vlgmr.msra.gmra.mrb[0].mxu0 %v29_v30 }
  0x23   :  { %462 = vmatpush3.bf16.msra.mxu1 %v509_v35 }
  0xf5   :  { %v172_v43 = vpop.f32.mrb[0].mxu0 }
  0xf6   :  { %v173_v44 = vadd.f32 %v172_v43, %v51_v41  ;;  %v174_v45 = vpop.f32.mrb[1].mxu0 }
  0xf7   :  { %v175_v46 = vadd.f32 %v174_v45, %v55_v42  ;;  %v176_v47 = vpop.f32.mrb[2].mxu0 }
  0xf8   :  { %v177_v48 = vadd.f32 %v176_v47, %v51_v41  ;;  %v178_v49 = vpop.f32.mrb[3].mxu0  ;;  %v181_v51 = vmax.f32 %v173_v44, 0.0 }
  0xf9   :  { %v179_v50 = vadd.f32 %v178_v49, %v55_v42  ;;  %v182_v53 = vmax.f32 %v175_v46, 0.0 }
  0xfa   :  { %v183_v52 = vmax.f32 %v177_v48, 0.0 }
  0xfb   :  { %v184_v54 = vmax.f32 %v179_v50, 0.0 }
  0xfc   :  { %v185_v55 = vpack.c.bf16 %v183_v52, %v181_v51 }
  0xfd   :  { %v186_v56 = vpack.c.bf16 %v184_v54, %v182_v53 }
  0xff   :  { %354 = vmatprep.mubr.bf16.mxu1 %v186_v56 }
 0x100   :  { %355 = vmatmul.mubr.bf16.vlgmr.msra.gmra.mrb[0].mxu1 %v185_v55 }
 0x1d3   :  { %v463_v57 = vpop.f32.mrb[0].mxu1 }
 0x1d4   :  { %v464_v59 = vpop.f32.mrb[1].mxu1 }
 0x1d5   :  { %v465_v60 = vadd.f32 %v464_v59, %v463_v57  ;;  %v466_v61 = vpop.f32.mrb[2].mxu1 }
 0x1d6   :  { %v467_v62 = vpop.f32.mrb[3].mxu1 }
 0x1d7   :  { %v357_v63 = vadd.f32 %v465_v60, %v428_v58  ;;  %v468_v0 = vadd.f32 %v467_v62, %v466_v61 }
 0x1d9   :  { %v360_v1 = vadd.f32 %v468_v0, %v428_v58  ;;  %v363_v2 = vadd.f32 %v357_v63, %v27_v26 }
 0x1db   :  { %367 = vadd.xlane.f32.xlu0 %v363_v2  ;;  %v364_v3 = vadd.f32 %v360_v1, %v28_v27 }
 0x1df   :  { %369 = vadd.xlane.f32.xlu0 %v364_v3 }
 0x268   :  { %v368_v4 = vpop.xlane.xlu0 %367 }
 0x269   :  { %v372_v5 = vmul.f32 0.0078125, %v368_v4 }
 0x26b   :  { %v374_v6 = vsub.f32 %v363_v2, %v372_v5 }
 0x26c   :  { %v370_v7 = vpop.xlane.xlu0 %369 }
 0x26d   :  { %v373_v8 = vmul.f32 0.0078125, %v370_v7  ;;  %v376_v9 = vmul.f32 %v374_v6, %v374_v6 }
 0x26f   :  { %v375_v10 = vsub.f32 %v364_v3, %v373_v8  ;;  %378 = vadd.xlane.f32.xlu1 %v376_v9 }
 0x271   :  { %v377_v11 = vmul.f32 %v375_v10, %v375_v10 }
 0x273   :  { %380 = vadd.xlane.f32.xlu1 %v377_v11 }
 0x2fc   :  { %v379_v12 = vpop.xlane.xlu1 %378 }
 0x2fd   :  { %v382_v13 = vmul.f32 0.0078125, %v379_v12 }
 0x2ff   :  { %v384_v14 = vadd.f32 1e-05, %v382_v13 }
 0x300   :  { %v381_v15 = vpop.xlane.xlu1 %380 }
 0x301   :  { %510 = vrsqrt.f32 %v384_v14  ;;  %v383_v16 = vmul.f32 0.0078125, %v381_v15 }
 0x303   :  { %v385_v17 = vadd.f32 1e-05, %v383_v16 }
 0x305   :  { %512 = vrsqrt.f32 %v385_v17 }
 0x30b   :  { %v511_v18 = vpop.eup %510 }
 0x30c   :  { %v388_v20 = vmul.f32 %v511_v18, %v374_v6 }
 0x30e   :  { %v396_v22 = vmul.f32 %v445_v19, %v388_v20 }
 0x30f   :  { %v513_v23 = vpop.eup %512 }
 0x310   :  { %v404_v24 = vadd.f32 %v446_v21, %v396_v22  ;;  %v389_v25 = vmul.f32 %v513_v23, %v375_v10 }
 0x312   :  { %406 = vst [vmem:[%s682_s7] sm:$0xff] %v404_v24  ;;  %v397_v26 = vmul.f32 %v445_v19, %v389_v25 }
 0x314   :  { %v405_v27 = vadd.f32 %v446_v21, %v397_v26 }
 0x316   :  { %407 = vst [vmem:[%s682_s7 + $0x8] sm:$0xff] %v405_v27 }

// kernel: _lambda_.19
= control target key start
LH: loop header
LB: loop body
LE: loop exit
PB: predicated region body
PF: predicated region fallthrough
CT: control target
= control target key end

     0   :  { %v233_v1 = vmov 0   ;;  %v234_v2 = vmov 0.0   ;;  %v173_v20 = vlaneseq  ;;  %s315_s1 = inlined_call_operand.vmem [shape: bf16[128,256], index: 1, kind: input, shape index: {}]   ;;  %s316_s0 = inlined_call_operand.vmem [shape: f32[6,128], index: 0, kind: input, shape index: {}]   ;;  %s317_s2 = inlined_call_operand.vmem [shape: f32[1,256], index: 2, kind: input, shape index: {}]   ;;  %s318_s3 = inlined_call_operand.vmem [shape: f32[6,256], index: 3, kind: output, shape index: {}]  }
   0x1   :  { %v209_v0 = vld [vmem:[%s315_s1 + $0x4] ss:$8 sps:$4 sm:$0xff]   ;;  %153 = vmatprep.mubr.bf16.mxu0 %v233_v1  ;;  %19 = vst [vmem:[#allocation2] sm:$0x3f] %v234_v2  ;;  %20 = vst [vmem:[#allocation2 + $0x8] sm:$0x3f] %v234_v2 }
   0x2   :  { %v211_v3 = vld [vmem:[%s315_s1] ss:$8 sps:$4 sm:$0xff]   ;;  %121 = vmatprep.subr.bf16.mxu0 %v209_v0  ;;  %v212_v4 = vld [vmem:[%s315_s1 + $0x14] ss:$8 sps:$4 sm:$0xff]   ;;  %v214_v5 = vld [vmem:[%s315_s1 + $0x10] ss:$8 sps:$4 sm:$0xff]  }
   0x3   :  { %122 = vmatpush1.bf16.msra.mxu0 %v211_v3  ;;  %v215_v6 = vld [vmem:[%s315_s1 + $0x24] ss:$8 sps:$4 sm:$0xff]   ;;  %v217_v7 = vld [vmem:[%s315_s1 + $0x20] ss:$8 sps:$4 sm:$0xff]   ;;  %v218_v8 = vld [vmem:[%s315_s1 + $0x34] ss:$8 sps:$4 sm:$0xff]  }
   0x4   :  { %123 = vmatprep.subr.bf16.mxu0 %v212_v4  ;;  %v220_v9 = vld [vmem:[%s315_s1 + $0x30] ss:$8 sps:$4 sm:$0xff]   ;;  %v221_v10 = vld [vmem:[%s315_s1 + $0x44] ss:$8 sps:$4 sm:$0xff]   ;;  %v223_v11 = vld [vmem:[%s315_s1 + $0x40] ss:$8 sps:$4 sm:$0xff]  }
   0x5   :  { %v224_v12 = vld [vmem:[%s315_s1 + $0x54] ss:$8 sps:$4 sm:$0xff]   ;;  %v226_v13 = vld [vmem:[%s315_s1 + $0x50] ss:$8 sps:$4 sm:$0xff]   ;;  %v227_v14 = vld [vmem:[%s315_s1 + $0x64] ss:$8 sps:$4 sm:$0xff]  }
   0x6   :  { %v229_v15 = vld [vmem:[%s315_s1 + $0x60] ss:$8 sps:$4 sm:$0xff]   ;;  %v230_v16 = vld [vmem:[%s315_s1 + $0x74] ss:$8 sps:$4 sm:$0xff]   ;;  %v232_v17 = vld [vmem:[%s315_s1 + $0x70] ss:$8 sps:$4 sm:$0xff]  }
   0x7   :  { %124 = vmatpush1.bf16.msra.mxu0 %v214_v5  ;;  %v23_v18 = vld [vmem:[%s316_s0] sm:$0x3f]  ;;  %v174_v22 = vshrl.u32 %v173_v20, 7 }
   0x8   :  { %125 = vmatprep.subr.bf16.mxu0 %v215_v6  ;;  %v24_v19 = vpack.c.bf16 %v23_v18, %v23_v18  ;;  %v21_v21 = vld [vmem:[#allocation2] sm:$0x3f]  ;;  %v22_v23 = vld [vmem:[#allocation2 + $0x8] sm:$0x3f] }
   0x9   :  { %v175_v29 = vsub.s32 0, %v174_v22  ;;  %v171_v31 = vld [vmem:[%s317_s2] sm:$0x3]  ;;  %v179_v32 = vsub.s32 1, %v174_v22 }
   0xb   :  { %126 = vmatpush1.bf16.msra.mxu0 %v217_v7  ;;  %v176_v33 = vrot.slane %v171_v31, %v175_v29  ;;  %v180_v34 = vrot.slane %v171_v31, %v179_v32 }
   0xc   :  { %127 = vmatprep.subr.bf16.mxu0 %v218_v8 }
   0xf   :  { %128 = vmatpush1.bf16.msra.mxu0 %v220_v9 }
  0x10   :  { %129 = vmatprep.subr.bf16.mxu0 %v221_v10 }
  0x13   :  { %130 = vmatpush1.bf16.msra.mxu0 %v223_v11 }
  0x14   :  { %131 = vmatprep.subr.bf16.mxu0 %v224_v12 }
  0x17   :  { %132 = vmatpush1.bf16.msra.mxu0 %v226_v13 }
  0x18   :  { %133 = vmatprep.subr.bf16.mxu0 %v227_v14 }
  0x1b   :  { %134 = vmatpush1.bf16.msra.mxu0 %v229_v15 }
  0x1c   :  { %135 = vmatprep.subr.bf16.mxu0 %v230_v16 }
  0x1f   :  { %136 = vmatpush1.bf16.msra.mxu0 %v232_v17 }
  0x22   :  { %154 = vmatmul.mubr.bf16.vlgmr.msra.gmra.mrb[0].mxu0 %v24_v19 }
  0xf5   :  { %v155_v24 = vpop.f32.mrb[0].mxu0 }
  0xf6   :  { %v162_v25 = vadd.f32 %v155_v24, %v21_v21  ;;  %v157_v26 = vpop.f32.mrb[1].mxu0 }
  0xf7   :  { %v163_v27 = vadd.f32 %v157_v26, %v22_v23  ;;  %v159_v28 = vpop.f32.mrb[2].mxu0 }
  0xf8   :  { %164 = vst [vmem:[#allocation2] sm:$0x3f] %v162_v25  ;;  %v160_v30 = vpop.f32.mrb[3].mxu0 }
  0xf9   :  { %165 = vst [vmem:[#allocation2 + $0x8] sm:$0x3f] %v163_v27 }
  0xff   :  { %v169_v35 = vld [vmem:[#allocation2] sm:$0x3f] }
 0x100   :  { %v183_v36 = vadd.f32 %v176_v33, %v169_v35  ;;  %v170_v37 = vld [vmem:[#allocation2 + $0x8] sm:$0x3f] }
 0x101   :  { %v184_v38 = vadd.f32 %v180_v34, %v170_v37 }
 0x102   :  { %185 = vst [vmem:[%s318_s3] sm:$0x3f] %v183_v36 }
 0x103   :  { %186 = vst [vmem:[%s318_s3 + $0x8] sm:$0x3f] %v184_v38 }

// kernel: _lambda_.18
= control target key start
LH: loop header
LB: loop body
LE: loop exit
PB: predicated region body
PF: predicated region fallthrough
CT: control target
= control target key end

     0   :  { %v236_v0 = vmov 0.0   ;;  %vm237_vm0 = vmmov 0   ;;  %vm150_vm1 = vcmask 1045504   ;;  %s307_s1 = inlined_call_operand.vmem [shape: bf16[128,128], index: 1, kind: input, shape index: {}]   ;;  %s308_s0 = inlined_call_operand.vmem [shape: f32[6,128], index: 0, kind: input, shape index: {}]   ;;  %s309_s2 = inlined_call_operand.vmem [shape: f32[1,128], index: 2, kind: input, shape index: {}]   ;;  %s310_s3 = inlined_call_operand.vmem [shape: f32[1,128], index: 3, kind: input, shape index: {}]   ;;  %s311_s4 = inlined_call_operand.vmem [shape: f32[1,128], index: 4, kind: input, shape index: {}]   ;;  %s312_s5 = inlined_call_operand.vmem [shape: f32[6,128], index: 5, kind: output, shape index: {}]  }
   0x1   :  { %204 = vmatprep.subr.bf16.mxu0 %v236_v0  ;;  %25 = vst [vmem:[#allocation2] sm:$0x3f] %v236_v0  ;;  %v226_v1 = vld [vmem:[%s307_s1] sm:$0xff]   ;;  %220 = vmatprep.mubr.msk.bf16.mxu0 %vm237_vm0, %v236_v0  ;;  %v227_v2 = vld [vmem:[%s307_s1 + $0x8] sm:$0xff]   ;;  %v228_v3 = vld [vmem:[%s307_s1 + $0x10] sm:$0xff]  }
   0x2   :  { %205 = vmatpush3.bf16.msra.mxu0 %v226_v1  ;;  %v229_v4 = vld [vmem:[%s307_s1 + $0x18] sm:$0xff]   ;;  %v230_v5 = vld [vmem:[%s307_s1 + $0x20] sm:$0xff]   ;;  %v231_v6 = vld [vmem:[%s307_s1 + $0x28] sm:$0xff]  }
   0x3   :  { %206 = vmatprep.subr.bf16.mxu0 %v236_v0  ;;  %v232_v7 = vld [vmem:[%s307_s1 + $0x30] sm:$0xff]   ;;  %v233_v8 = vld [vmem:[%s307_s1 + $0x38] sm:$0xff]   ;;  %v27_v9 = vld [vmem:[%s308_s0] sm:$0x3f] }
   0x4   :  { %v28_v10 = vpack.c.bf16 %v27_v9, %v27_v9  ;;  %v192_v17 = vld [vmem:[%s309_s2] ss:$0 sm:$0xff] }
   0x5   :  { %v193_v31 = vld [vmem:[%s310_s3] ss:$0 sm:$0xff] }
   0x6   :  { %207 = vmatpush3.bf16.msra.mxu0 %v227_v2  ;;  %v194_v33 = vld [vmem:[%s311_s4] ss:$0 sm:$0xff] }
   0x7   :  { %208 = vmatprep.subr.bf16.mxu0 %v236_v0 }
   0x8   :  { %v26_v11 = vld [vmem:[#allocation2] sm:$0x3f] }
   0xa   :  { %209 = vmatpush3.bf16.msra.mxu0 %v228_v3 }
   0xb   :  { %210 = vmatprep.subr.bf16.mxu0 %v236_v0 }
   0xe   :  { %211 = vmatpush3.bf16.msra.mxu0 %v229_v4 }
   0xf   :  { %212 = vmatprep.subr.bf16.mxu0 %v236_v0 }
  0x12   :  { %213 = vmatpush3.bf16.msra.mxu0 %v230_v5 }
  0x13   :  { %214 = vmatprep.subr.bf16.mxu0 %v236_v0 }
  0x16   :  { %215 = vmatpush3.bf16.msra.mxu0 %v231_v6 }
  0x17   :  { %216 = vmatprep.subr.bf16.mxu0 %v236_v0 }
  0x1a   :  { %217 = vmatpush3.bf16.msra.mxu0 %v232_v7 }
  0x1b   :  { %218 = vmatprep.subr.bf16.mxu0 %v236_v0 }
  0x1e   :  { %219 = vmatpush3.bf16.msra.mxu0 %v233_v8 }
  0x21   :  { %221 = vmatmul.mubr.bf16.vlgmr.msra.gmra.mrb[0].mxu0 %v28_v10 }
  0xf4   :  { %v127_v12 = vpop.f32.mrb[0].mxu0 }
  0xf5   :  { %v133_v13 = vadd.f32 %v127_v12, %v26_v11  ;;  %v222_v14 = vpop.f32.mrb[1].mxu0 }
  0xf6   :  { %v130_v15 = vpop.f32.mrb[2].mxu0 }
  0xf7   :  { %134 = vst [vmem:[#allocation2] sm:$0x3f] %v133_v13  ;;  %v223_v16 = vpop.f32.mrb[3].mxu0 }
  0xfe   :  { %v138_v18 = vld [vmem:[#allocation2] sm:$0x3f] }
  0xff   :  { %v148_v19 = vadd.f32 %v192_v17, %v138_v18 }
 0x101   :  { %v149_v20 = vmax.f32 %v148_v19, 0.0 }
 0x103   :  { %v151_v21 = vsel %vm150_vm1, %v149_v20, 0.0 }
 0x104   :  { %152 = vadd.xlane.f32.xlu0 %v151_v21 }
 0x191   :  { %v153_v22 = vpop.xlane.xlu0 %152 }
 0x192   :  { %v155_v23 = vmul.f32 0.0078125, %v153_v22 }
 0x194   :  { %v156_v24 = vsub.f32 %v149_v20, %v155_v23 }
 0x196   :  { %v157_v25 = vmul.f32 %v156_v24, %v156_v24 }
 0x198   :  { %v158_v26 = vsel %vm150_vm1, %v157_v25, 0.0 }
 0x199   :  { %159 = vadd.xlane.f32.xlu0 %v158_v26 }
 0x226   :  { %v160_v27 = vpop.xlane.xlu0 %159 }
 0x227   :  { %v161_v28 = vmul.f32 0.0078125, %v160_v27 }
 0x229   :  { %v162_v29 = vadd.f32 1e-05, %v161_v28 }
 0x22b   :  { %234 = vrsqrt.f32 %v162_v29 }
 0x235   :  { %v235_v30 = vpop.eup %234 }
 0x236   :  { %v164_v32 = vmul.f32 %v235_v30, %v156_v24 }
 0x238   :  { %v171_v34 = vmul.f32 %v193_v31, %v164_v32 }
 0x23a   :  { %v178_v35 = vadd.f32 %v194_v33, %v171_v34 }
 0x23c   :  { %179 = vst [vmem:[%s312_s5] sm:$0x3f] %v178_v35 }

</bundles_post_ra>
